<compile_context>
chip_gen: v7x
topology: tpu7x:2x2x1
jax: 0.10.0
libtpu: 0.0.40
codegen_flags: <defaults>
</compile_context>

<pallas_src>
import jax
import jax.numpy as jnp
from jax.experimental import pallas as pl
from jax.experimental.pallas import tpu as pltpu


# --------------------------------------------------------------------------
# Fused Pallas kernel: whole forward for one batch tile.
# --------------------------------------------------------------------------

def _enet_fused_kernel(x_ref, stem_w_ref, stem_b_ref, exp_w_ref, exp_b_ref,
                       dw_w_ref, dw_b_ref, se_w1_ref, se_b1_ref,
                       se_w2_ref, se_b2_ref, proj_w_ref, proj_b_ref,
                       head_w_ref, head_b_ref, o_ref, dw_buf):
    """stem -> MBConv (expand / dw3x3 / SE / project+residual) -> head -> GAP.

    One grid step processes B_tile images; every intermediate stays in
    VMEM/vregs.  The only HBM traffic is the (B_tile, Ho, Wo, 27) bf16 input
    read and one lane-dense (B_tile, 128) f32 pooled-feature write.
    """
    f32 = jnp.float32
    bf16 = jnp.bfloat16
    B, Ho, Wo, K = x_ref.shape            # K = 9 * Cin = 27
    Cs = stem_w_ref.shape[-1]             # stem/project channels, padded to 128
    Ce = exp_w_ref.shape[-1]              # expanded channels (128)
    Ch = head_w_ref.shape[-1]             # head channels, padded to 128
    S = Ho * Wo
    M = B * S

    def swish(v):
        return v * jax.nn.sigmoid(v)

    # ---- stem: single bf16 K=27 matmul over the wrapper-built im2col taps.
    taps = x_ref[...].reshape(M, K)                       # bf16 (M, 27)
    stem = jnp.dot(taps, stem_w_ref[...], preferred_element_type=f32)
    stem = swish(stem + stem_b_ref[...])                  # (M, Cs) f32

    # ---- MBConv expand 1x1 (+folded BN + swish): bf16 MXU, f32 accumulate.
    h = jnp.dot(stem.astype(bf16), exp_w_ref[...], preferred_element_type=f32)
    h = swish(h + exp_b_ref[...])                         # (M, Ce)

    # ---- depthwise 3x3 (+folded BN + swish), SAME padding.
    # W (sublane axis) shifts read an 8-aligned VMEM scratch with a 1-column
    # zero halo on each side; only those two halo columns are zeroed per step
    # (the interior is fully overwritten, so no full-buffer zero and the
    # pattern stays correct when the "parallel" axis is split across cores).
    # H shifts are plain untiled-axis row concats with a zero row.
    h4 = h.reshape(B, Ho, Wo, Ce)
    zcol = jnp.zeros((B, Ho, 1, Ce), f32)
    dw_buf[:, :, 0:1, :] = zcol                           # left halo
    dw_buf[:, :, Wo + 1:Wo + 2, :] = zcol                 # right halo
    dw_buf[:, :, 1:Wo + 1, :] = h4                        # interior
    zrow = jnp.zeros((B, 1, Wo, Ce), f32)

    def shift_h(v, dh):        # t[:, i] = v[:, i + dh], zeros past the edge
        if dh == 0:
            return v
        if dh == 1:
            return jnp.concatenate([v[:, 1:], zrow], axis=1)
        return jnp.concatenate([zrow, v[:, :-1]], axis=1)

    acc = jnp.zeros((B, Ho, Wo, Ce), f32)
    for kw in range(3):
        # read the W-shifted window straight from the ref (no full-buffer load)
        colwin = dw_buf[:, :, kw:kw + Wo, :]              # (B, Ho, Wo, Ce)
        for kh in range(3):
            acc = acc + shift_h(colwin, kh - 1) * dw_w_ref[3 * kh + kw, :]
    h = swish(acc + dw_b_ref[...]).reshape(M, Ce)         # (M, Ce)

    # ---- squeeze-and-excite on the VPU (no M<=8 / N=8 MXU pushes).
    s = jnp.mean(h.reshape(B, S, Ce), axis=1)             # (B, Ce)
    s1 = jnp.sum(s[:, None, :] * se_w1_ref[...][None, :, :], axis=-1)
    s1 = swish(s1 + se_b1_ref[...])                       # (B, se_ch)
    s2 = jnp.sum(s1[:, :, None] * se_w2_ref[...][None, :, :], axis=1)
    s2 = jax.nn.sigmoid(s2 + se_b2_ref[...])              # (B, Ce)
    h = (h.reshape(B, S, Ce) * s2[:, None, :]).reshape(M, Ce)

    # ---- project 1x1 (+folded BN, linear) fused with the residual add.
    p = jnp.dot(h.astype(bf16), proj_w_ref[...], preferred_element_type=f32)
    p = p + proj_b_ref[...] + stem                        # (M, Cs)

    # ---- head 1x1 (+folded BN + swish) fused with global average pooling.
    hd = jnp.dot(p.astype(bf16), head_w_ref[...], preferred_element_type=f32)
    hd = swish(hd + head_b_ref[...])                      # (M, Ch)
    o_ref[0] = jnp.mean(hd.reshape(B, S, Ch), axis=1)     # (B, Ch) lane-dense


# --------------------------------------------------------------------------
# Parameters (deterministic synthetic init) and BN folding
# --------------------------------------------------------------------------

def fold_bn(w, bn, eps=1e-3):
    """Fold inference BatchNorm (gamma, beta, mean, var) into conv weight/bias.

    w last axis == output channels.
    """
    gamma, beta, mean, var = bn
    scale = gamma / jnp.sqrt(var + eps)
    return w * scale, beta - mean * scale


def init_params(key, in_ch=3, stem_ch=32, exp_ratio=4, se_ch=8,
                head_ch=64, out_dim=5):
    ks = jax.random.split(key, 16)
    exp_ch = stem_ch * exp_ratio

    def bn(k, c):
        k1, k2, k3, k4 = jax.random.split(k, 4)
        return (jax.random.uniform(k1, (c,), minval=0.8, maxval=1.2),
                0.05 * jax.random.normal(k2, (c,)),
                0.05 * jax.random.normal(k3, (c,)),
                jax.random.uniform(k4, (c,), minval=0.5, maxval=1.5))

    def winit(k, shape, fan_in):
        return jax.random.normal(k, shape) * (2.0 / fan_in) ** 0.5

    return {
        "stem_w": winit(ks[0], (3, 3, in_ch, stem_ch), 9 * in_ch),
        "stem_bn": bn(ks[1], stem_ch),
        "expand_w": winit(ks[2], (stem_ch, exp_ch), stem_ch),
        "expand_bn": bn(ks[3], exp_ch),
        "dw_w": winit(ks[4], (3, 3, exp_ch), 9),
        "dw_bn": bn(ks[5], exp_ch),
        "se_w1": winit(ks[6], (exp_ch, se_ch), exp_ch),
        "se_b1": jnp.zeros((se_ch,), jnp.float32),
        "se_w2": winit(ks[7], (se_ch, exp_ch), se_ch),
        "se_b2": jnp.zeros((exp_ch,), jnp.float32),
        "proj_w": winit(ks[8], (exp_ch, stem_ch), exp_ch),
        "proj_bn": bn(ks[9], stem_ch),
        "head_w": winit(ks[10], (stem_ch, head_ch), stem_ch),
        "head_bn": bn(ks[11], head_ch),
        "fc_w": winit(ks[12], (head_ch, out_dim), head_ch),
        "fc_b": 0.01 * jax.random.normal(ks[13], (out_dim,)),
    }


def _pick_batch_tile(n):
    """Fold several images per grid step (bigger MXU M dim) while keeping
    >= 2 'parallel' grid steps when possible so v7x's 2 TensorCores both run."""
    for d in (8, 4, 2):
        if n % d == 0 and n // d >= 2:
            return d
    return 1


# --------------------------------------------------------------------------
# Forward pass: one fused pallas_call over batch tiles + tiny FC in XLA
# --------------------------------------------------------------------------

def enetv2_forward(params, x_nchw):
    """x_nchw: (N, C, H, W) PyTorch convention -> logits (N, out_dim)."""
    LANE = 128
    bf16 = jnp.bfloat16
    x = jnp.transpose(x_nchw, (0, 2, 3, 1)).astype(jnp.float32)   # NHWC
    N, H, W, Cin = x.shape
    Ho, Wo = -(-H // 2), -(-W // 2)

    # TF/EfficientNet "SAME" padding for the stride-2 3x3 stem: pad_total = 1
    # for even H/W, applied 0 top/left and 1 bottom/right (asymmetric).
    pad_h = max((Ho - 1) * 2 + 3 - H, 0)
    pad_w = max((Wo - 1) * 2 + 3 - W, 0)
    xpad = jnp.pad(x, ((0, 0), (pad_h // 2, pad_h - pad_h // 2),
                       (pad_w // 2, pad_w - pad_w // 2), (0, 0)))

    # Lane-packed im2col: (N, Ho, Wo, 9*Cin).  27 lanes instead of Cin=3, and
    # the stem becomes a single bf16 K=27 MXU matmul inside the kernel.
    taps = [xpad[:, kh:kh + 2 * Ho:2, kw:kw + 2 * Wo:2, :]
            for kh in range(3) for kw in range(3)]
    x_taps = jnp.concatenate(taps, axis=-1).astype(bf16)          # (N,Ho,Wo,27)

    # Fold inference BatchNorm once, outside the kernel.
    sw, sb = fold_bn(params["stem_w"], params["stem_bn"])
    ew, eb = fold_bn(params["expand_w"], params["expand_bn"])
    dww, dwb = fold_bn(params["dw_w"], params["dw_bn"])
    pw, pb = fold_bn(params["proj_w"], params["proj_bn"])
    hw, hb = fold_bn(params["head_w"], params["head_bn"])

    Cin9 = 9 * Cin
    stem_ch, exp_ch, head_ch = sw.shape[-1], ew.shape[-1], hw.shape[-1]
    se_ch = params["se_w1"].shape[-1]
    rup = lambda c: -(-c // LANE) * LANE
    Cs, Ce, Ch = rup(stem_ch), rup(exp_ch), rup(head_ch)   # all 128 here

    def pad2(a, r, c):        # zero-pad a 2-D weight/bias to (r, c)
        return jnp.pad(a, ((0, r - a.shape[0]), (0, c - a.shape[1])))

    # Matmul N dims zero-padded to 128 (lane-dense MXU + store); 1x1 weights
    # feeding the MXU are bf16, vector-path (dw / SE) weights stay f32.
    weights = [
        pad2(sw.reshape(Cin9, stem_ch), Cin9, Cs).astype(bf16),   # stem matmul
        pad2(sb.reshape(1, stem_ch), 1, Cs),
        pad2(ew, Cs, Ce).astype(bf16),                            # expand 1x1
        pad2(eb.reshape(1, exp_ch), 1, Ce),
        pad2(dww.reshape(9, exp_ch), 9, Ce),                      # depthwise
        pad2(dwb.reshape(1, exp_ch), 1, Ce),
        pad2(params["se_w1"].T, se_ch, Ce),                       # SE reduce
        params["se_b1"].reshape(1, se_ch),
        pad2(params["se_w2"], se_ch, Ce),                         # SE expand
        pad2(params["se_b2"].reshape(1, exp_ch), 1, Ce),
        pad2(pw, Ce, Cs).astype(bf16),                            # project 1x1
        pad2(pb.reshape(1, stem_ch), 1, Cs),
        pad2(hw, Cs, Ch).astype(bf16),                            # head 1x1
        pad2(hb.reshape(1, head_ch), 1, Ch),
    ]
    w_specs = [pl.BlockSpec(w.shape, lambda n: (0, 0)) for w in weights]

    B_tile = _pick_batch_tile(N)
    G = N // B_tile
    S = Ho * Wo
    Wpad = -(-(Wo + 2) // 8) * 8          # 8-aligned W extent for the dw halo

    flops = 2 * N * S * (Cin9 * Cs + Cs * Ce + 9 * Ce + Ce * Cs + Cs * Ch)
    transcendentals = N * S * (Cs + 2 * Ce + Ch)        # swish/sigmoid exps
    bytes_accessed = (x_taps.size * 2
                      + sum(int(w.size) * w.dtype.itemsize for w in weights)
                      + N * Ch * 4)

    pooled = pl.pallas_call(
        _enet_fused_kernel,
        out_shape=jax.ShapeDtypeStruct((G, B_tile, Ch), jnp.float32),
        grid=(G,),
        in_specs=[pl.BlockSpec((B_tile, Ho, Wo, Cin9),
                               lambda n: (n, 0, 0, 0))] + w_specs,
        out_specs=pl.BlockSpec((1, B_tile, Ch), lambda n: (n, 0, 0)),
        scratch_shapes=[pltpu.VMEM((B_tile, Ho, Wpad, Ce), jnp.float32)],
        compiler_params=pltpu.CompilerParams(
            dimension_semantics=("parallel",),   # 2x TC sharding on v7x
            # Explicit scoped-VMEM cap: raises v5e's 16 MiB default and stays
            # well below every generation's physical VMEM (v7x: 64 MiB / TC),
            # leaving double-buffering headroom.
            vmem_limit_bytes=32 * 1024 * 1024),
        cost_estimate=pl.CostEstimate(flops=int(flops),
                                      transcendentals=int(transcendentals),
                                      bytes_accessed=int(bytes_accessed)),
    )(x_taps, *weights)

    pooled = pooled.reshape(N, Ch)[:, :head_ch]
    # Final (head_ch -> out_dim=5) FC: output is far below the 128-lane width,
    # so a Pallas store would be masked + pure launch overhead; leave to XLA.
    # (Dropout before it is identity at inference.)
    return pooled @ params["fc_w"] + params["fc_b"]


# --------------------------------------------------------------------------
# Pure-JAX f32 reference (same math, no Pallas) for tolerance checking
# --------------------------------------------------------------------------

def enetv2_reference(params, x_nchw):
    x = jnp.transpose(x_nchw, (0, 2, 3, 1)).astype(jnp.float32)
    N, H, W, Cin = x.shape
    swish = lambda v: v * jax.nn.sigmoid(v)
    sw, sb = fold_bn(params["stem_w"], params["stem_bn"])
    ew, eb = fold_bn(params["expand_w"], params["expand_bn"])
    dww, dwb = fold_bn(params["dw_w"], params["dw_bn"])
    pw, pb = fold_bn(params["proj_w"], params["proj_bn"])
    hw, hb = fold_bn(params["head_w"], params["head_bn"])
    Ho, Wo = -(-H // 2), -(-W // 2)
    padh = max((Ho - 1) * 2 + 3 - H, 0)
    padw = max((Wo - 1) * 2 + 3 - W, 0)
    xpad = jnp.pad(x, ((0, 0), (padh // 2, padh - padh // 2),
                       (padw // 2, padw - padw // 2), (0, 0)))
    stem = jax.lax.conv_general_dilated(
        xpad, sw, (2, 2), "VALID",
        dimension_numbers=("NHWC", "HWIO", "NHWC")) + sb
    stem = swish(stem)
    h = swish(jnp.einsum("nhwc,cd->nhwd", stem, ew) + eb)
    h = swish(jax.lax.conv_general_dilated(
        h, dww.reshape(3, 3, 1, -1), (1, 1), "SAME",
        dimension_numbers=("NHWC", "HWIO", "NHWC"),
        feature_group_count=h.shape[-1]) + dwb)
    s = jnp.mean(h, axis=(1, 2))
    s = swish(s @ params["se_w1"] + params["se_b1"])
    s = jax.nn.sigmoid(s @ params["se_w2"] + params["se_b2"])
    h = h * s[:, None, None, :]
    p = jnp.einsum("nhwc,cd->nhwd", h, pw) + pb + stem
    hd = swish(jnp.einsum("nhwc,cd->nhwd", p, hw) + hb)
    pooled = jnp.mean(hd, axis=(1, 2))
    return pooled @ params["fc_w"] + params["fc_b"]


# --------------------------------------------------------------------------

if __name__ == "__main__":
    key = jax.random.PRNGKey(0)
    k_param, k_x = jax.random.split(key)

    out_dim = 5
    params = init_params(k_param, in_ch=3, out_dim=out_dim)

    # PyTorch-style NCHW input: batch=2, channels=3, spatial=16x16
    x = jax.random.normal(k_x, (2, 3, 16, 16), dtype=jnp.float32)

    logits = jax.jit(enetv2_forward)(params, x)
    logits = jax.block_until_ready(logits)

    assert logits.shape == (2, out_dim), logits.shape
    assert jnp.all(jnp.isfinite(logits))

    # Tolerance check vs. a pure-JAX f32 reference (bf16 MXU operands in the
    # kernel give ~1e-2-level relative differences; loose bound on purpose).
    ref = enetv2_reference(params, x)
    assert jnp.allclose(logits, ref, rtol=2e-1, atol=2e-1), (
        float(jnp.max(jnp.abs(logits - ref))))

    print("KERNEL_OK")
</pallas_src>

<mosaic_0001>
module attributes {stable_mosaic.version = 11 : i64} {
  func.func @_enet_fused_kernel(%arg0: i32, %arg1: memref<1x8x8x27xbf16, #tpu.memory_space<vmem>>, %arg2: memref<27x128xbf16, #tpu.memory_space<vmem>>, %arg3: memref<1x128xf32, #tpu.memory_space<vmem>>, %arg4: memref<128x128xbf16, #tpu.memory_space<vmem>>, %arg5: memref<1x128xf32, #tpu.memory_space<vmem>>, %arg6: memref<9x128xf32, #tpu.memory_space<vmem>>, %arg7: memref<1x128xf32, #tpu.memory_space<vmem>>, %arg8: memref<8x128xf32, #tpu.memory_space<vmem>>, %arg9: memref<1x8xf32, #tpu.memory_space<vmem>>, %arg10: memref<8x128xf32, #tpu.memory_space<vmem>>, %arg11: memref<1x128xf32, #tpu.memory_space<vmem>>, %arg12: memref<128x128xbf16, #tpu.memory_space<vmem>>, %arg13: memref<1x128xf32, #tpu.memory_space<vmem>>, %arg14: memref<128x128xbf16, #tpu.memory_space<vmem>>, %arg15: memref<1x128xf32, #tpu.memory_space<vmem>>, %arg16: memref<1x1x128xf32, #tpu.memory_space<vmem>>, %arg17: memref<1x8x16x128xf32, #tpu.memory_space<vmem>>) attributes {dimension_semantics = [#tpu.dimension_semantics<parallel>], iteration_bounds = array<i64: 2>, scalar_prefetch = 0 : i64, scratch_operands = 1 : i64, tpu.core_type = #tpu.core_type<tc>, window_params = [{transform_indices = @transform_0, window_bounds = array<i64: 1, 8, 8, 27>}, {pipeline_mode = #tpu.pipeline_mode<synchronous>, transform_indices = @transform_1, window_bounds = array<i64: 27, 128>}, {pipeline_mode = #tpu.pipeline_mode<synchronous>, transform_indices = @transform_2, window_bounds = array<i64: 1, 128>}, {pipeline_mode = #tpu.pipeline_mode<synchronous>, transform_indices = @transform_3, window_bounds = array<i64: 128, 128>}, {pipeline_mode = #tpu.pipeline_mode<synchronous>, transform_indices = @transform_4, window_bounds = array<i64: 1, 128>}, {pipeline_mode = #tpu.pipeline_mode<synchronous>, transform_indices = @transform_5, window_bounds = array<i64: 9, 128>}, {pipeline_mode = #tpu.pipeline_mode<synchronous>, transform_indices = @transform_6, window_bounds = array<i64: 1, 128>}, {pipeline_mode = #tpu.pipeline_mode<synchronous>, transform_indices = @transform_7, window_bounds = array<i64: 8, 128>}, {pipeline_mode = #tpu.pipeline_mode<synchronous>, transform_indices = @transform_8, window_bounds = array<i64: 1, 8>}, {pipeline_mode = #tpu.pipeline_mode<synchronous>, transform_indices = @transform_9, window_bounds = array<i64: 8, 128>}, {pipeline_mode = #tpu.pipeline_mode<synchronous>, transform_indices = @transform_10, window_bounds = array<i64: 1, 128>}, {pipeline_mode = #tpu.pipeline_mode<synchronous>, transform_indices = @transform_11, window_bounds = array<i64: 128, 128>}, {pipeline_mode = #tpu.pipeline_mode<synchronous>, transform_indices = @transform_12, window_bounds = array<i64: 1, 128>}, {pipeline_mode = #tpu.pipeline_mode<synchronous>, transform_indices = @transform_13, window_bounds = array<i64: 128, 128>}, {pipeline_mode = #tpu.pipeline_mode<synchronous>, transform_indices = @transform_14, window_bounds = array<i64: 1, 128>}, {transform_indices = @transform_15, window_bounds = array<i64: 1, 1, 128>}]} {
    %c0 = arith.constant 0 : index
    %c0_0 = arith.constant 0 : index
    %c0_1 = arith.constant 0 : index
    %c0_2 = arith.constant 0 : index
    %0 = vector.load %arg1[%c0, %c0_0, %c0_1, %c0_2] : memref<1x8x8x27xbf16, #tpu.memory_space<vmem>>, vector<1x8x8x27xbf16>
    %1 = vector.shape_cast %0 : vector<1x8x8x27xbf16> to vector<64x27xbf16>
    %c0_3 = arith.constant 0 : index
    %c0_4 = arith.constant 0 : index
    %2 = vector.load %arg2[%c0_3, %c0_4] : memref<27x128xbf16, #tpu.memory_space<vmem>>, vector<27x128xbf16>
    %cst = arith.constant dense<0.000000e+00> : vector<64x128xf32>
    %3 = tpu.matmul %1, %2, %cst {dimension_numbers = #tpu.dot_dimension_numbers<[1], [0], [0], [1], [0, 0, 1, 1], [], []>} : vector<64x27xbf16>, vector<27x128xbf16>, vector<64x128xf32> -> vector<64x128xf32>
    %c0_5 = arith.constant 0 : index
    %c0_6 = arith.constant 0 : index
    %4 = vector.load %arg3[%c0_5, %c0_6] : memref<1x128xf32, #tpu.memory_space<vmem>>, vector<1x128xf32>
    %5 = vector.broadcast %4 : vector<1x128xf32> to vector<64x128xf32>
    %6 = arith.addf %3, %5 : vector<64x128xf32>
    %7 = arith.negf %6 : vector<64x128xf32>
    %8 = math.exp %7 : vector<64x128xf32>
    %cst_7 = arith.constant 1.000000e+00 : f32
    %9 = vector.broadcast %cst_7 : f32 to vector<64x128xf32>
    %10 = arith.addf %9, %8 : vector<64x128xf32>
    %11 = arith.divf %9, %10 : vector<64x128xf32>
    %12 = arith.mulf %6, %11 : vector<64x128xf32>
    %13 = arith.truncf %12 : vector<64x128xf32> to vector<64x128xbf16>
    %c0_8 = arith.constant 0 : index
    %c0_9 = arith.constant 0 : index
    %14 = vector.load %arg4[%c0_8, %c0_9] : memref<128x128xbf16, #tpu.memory_space<vmem>>, vector<128x128xbf16>
    %cst_10 = arith.constant dense<0.000000e+00> : vector<64x128xf32>
    %15 = tpu.matmul %13, %14, %cst_10 {dimension_numbers = #tpu.dot_dimension_numbers<[1], [0], [0], [1], [0, 0, 1, 1], [], []>} : vector<64x128xbf16>, vector<128x128xbf16>, vector<64x128xf32> -> vector<64x128xf32>
    %c0_11 = arith.constant 0 : index
    %c0_12 = arith.constant 0 : index
    %16 = vector.load %arg5[%c0_11, %c0_12] : memref<1x128xf32, #tpu.memory_space<vmem>>, vector<1x128xf32>
    %17 = vector.broadcast %16 : vector<1x128xf32> to vector<64x128xf32>
    %18 = arith.addf %15, %17 : vector<64x128xf32>
    %19 = arith.negf %18 : vector<64x128xf32>
    %20 = math.exp %19 : vector<64x128xf32>
    %cst_13 = arith.constant 1.000000e+00 : f32
    %21 = vector.broadcast %cst_13 : f32 to vector<64x128xf32>
    %22 = arith.addf %21, %20 : vector<64x128xf32>
    %23 = arith.divf %21, %22 : vector<64x128xf32>
    %24 = arith.mulf %18, %23 : vector<64x128xf32>
    %25 = vector.shape_cast %24 : vector<64x128xf32> to vector<1x8x8x128xf32>
    %cst_14 = arith.constant 0.000000e+00 : f32
    %26 = vector.broadcast %cst_14 : f32 to vector<1x8x1x128xf32>
    %c0_15 = arith.constant 0 : index
    %c0_16 = arith.constant 0 : index
    %c0_17 = arith.constant 0 : index
    %c0_18 = arith.constant 0 : index
    %27 = vector.load %arg17[%c0_15, %c0_16, %c0_17, %c0_18] : memref<1x8x16x128xf32, #tpu.memory_space<vmem>>, vector<1x8x1x128xf32>
    tpu.vector_store %arg17[%c0_15, %c0_16, %c0_17, %c0_18], %26 {strides = array<i32>} : memref<1x8x16x128xf32, #tpu.memory_space<vmem>>, vector<1x8x1x128xf32>,
    %c0_19 = arith.constant 0 : index
    %c0_20 = arith.constant 0 : index
    %c9 = arith.constant 9 : index
    %c0_21 = arith.constant 0 : index
    %28 = vector.load %arg17[%c0_19, %c0_20, %c9, %c0_21] : memref<1x8x16x128xf32, #tpu.memory_space<vmem>>, vector<1x8x1x128xf32>
    tpu.vector_store %arg17[%c0_19, %c0_20, %c9, %c0_21], %26 {strides = array<i32>} : memref<1x8x16x128xf32, #tpu.memory_space<vmem>>, vector<1x8x1x128xf32>,
    %c0_22 = arith.constant 0 : index
    %c0_23 = arith.constant 0 : index
    %c1 = arith.constant 1 : index
    %c0_24 = arith.constant 0 : index
    %29 = vector.load %arg17[%c0_22, %c0_23, %c1, %c0_24] : memref<1x8x16x128xf32, #tpu.memory_space<vmem>>, vector<1x8x8x128xf32>
    tpu.vector_store %arg17[%c0_22, %c0_23, %c1, %c0_24], %25 {strides = array<i32>} : memref<1x8x16x128xf32, #tpu.memory_space<vmem>>, vector<1x8x8x128xf32>,
    %cst_25 = arith.constant 0.000000e+00 : f32
    %30 = vector.broadcast %cst_25 : f32 to vector<1x1x8x128xf32>
    %cst_26 = arith.constant 0.000000e+00 : f32
    %31 = vector.broadcast %cst_26 : f32 to vector<1x8x8x128xf32>
    %c0_27 = arith.constant 0 : index
    %c0_28 = arith.constant 0 : index
    %c0_29 = arith.constant 0 : index
    %c0_30 = arith.constant 0 : index
    %32 = vector.load %arg17[%c0_27, %c0_28, %c0_29, %c0_30] : memref<1x8x16x128xf32, #tpu.memory_space<vmem>>, vector<1x8x8x128xf32>
    %33 = vector.extract_strided_slice %32 {offsets = [0, 0, 0, 0], sizes = [1, 7, 8, 128], strides = [1, 1, 1, 1]} : vector<1x8x8x128xf32> to vector<1x7x8x128xf32>
    %34 = tpu.concatenate %30, %33 in 1 : vector<1x1x8x128xf32>, vector<1x7x8x128xf32> -> vector<1x8x8x128xf32>
    %c0_31 = arith.constant 0 : index
    %c0_32 = arith.constant 0 : index
    %35 = vector.load %arg6[%c0_31, %c0_32] : memref<9x128xf32, #tpu.memory_space<vmem>>, vector<1x128xf32>
    %36 = vector.shape_cast %35 : vector<1x128xf32> to vector<128xf32>
    %37 = vector.shape_cast %36 : vector<128xf32> to vector<1x1x1x128xf32>
    %38 = vector.broadcast %37 : vector<1x1x1x128xf32> to vector<1x8x8x128xf32>
    %39 = arith.mulf %34, %38 : vector<1x8x8x128xf32>
    %40 = arith.addf %31, %39 : vector<1x8x8x128xf32>
    %c3 = arith.constant 3 : index
    %c0_33 = arith.constant 0 : index
    %41 = vector.load %arg6[%c3, %c0_33] : memref<9x128xf32, #tpu.memory_space<vmem>>, vector<1x128xf32>
    %42 = vector.shape_cast %41 : vector<1x128xf32> to vector<128xf32>
    %43 = vector.shape_cast %42 : vector<128xf32> to vector<1x1x1x128xf32>
    %44 = vector.broadcast %43 : vector<1x1x1x128xf32> to vector<1x8x8x128xf32>
    %45 = arith.mulf %32, %44 : vector<1x8x8x128xf32>
    %46 = arith.addf %40, %45 : vector<1x8x8x128xf32>
    %47 = vector.extract_strided_slice %32 {offsets = [0, 1, 0, 0], sizes = [1, 7, 8, 128], strides = [1, 1, 1, 1]} : vector<1x8x8x128xf32> to vector<1x7x8x128xf32>
    %48 = tpu.concatenate %47, %30 in 1 : vector<1x7x8x128xf32>, vector<1x1x8x128xf32> -> vector<1x8x8x128xf32>
    %c6 = arith.constant 6 : index
    %c0_34 = arith.constant 0 : index
    %49 = vector.load %arg6[%c6, %c0_34] : memref<9x128xf32, #tpu.memory_space<vmem>>, vector<1x128xf32>
    %50 = vector.shape_cast %49 : vector<1x128xf32> to vector<128xf32>
    %51 = vector.shape_cast %50 : vector<128xf32> to vector<1x1x1x128xf32>
    %52 = vector.broadcast %51 : vector<1x1x1x128xf32> to vector<1x8x8x128xf32>
    %53 = arith.mulf %48, %52 : vector<1x8x8x128xf32>
    %54 = arith.addf %46, %53 : vector<1x8x8x128xf32>
    %c0_35 = arith.constant 0 : index
    %c0_36 = arith.constant 0 : index
    %c1_37 = arith.constant 1 : index
    %c0_38 = arith.constant 0 : index
    %55 = vector.load %arg17[%c0_35, %c0_36, %c1_37, %c0_38] : memref<1x8x16x128xf32, #tpu.memory_space<vmem>>, vector<1x8x8x128xf32>
    %56 = vector.extract_strided_slice %55 {offsets = [0, 0, 0, 0], sizes = [1, 7, 8, 128], strides = [1, 1, 1, 1]} : vector<1x8x8x128xf32> to vector<1x7x8x128xf32>
    %57 = tpu.concatenate %30, %56 in 1 : vector<1x1x8x128xf32>, vector<1x7x8x128xf32> -> vector<1x8x8x128xf32>
    %c1_39 = arith.constant 1 : index
    %c0_40 = arith.constant 0 : index
    %58 = vector.load %arg6[%c1_39, %c0_40] : memref<9x128xf32, #tpu.memory_space<vmem>>, vector<1x128xf32>
    %59 = vector.shape_cast %58 : vector<1x128xf32> to vector<128xf32>
    %60 = vector.shape_cast %59 : vector<128xf32> to vector<1x1x1x128xf32>
    %61 = vector.broadcast %60 : vector<1x1x1x128xf32> to vector<1x8x8x128xf32>
    %62 = arith.mulf %57, %61 : vector<1x8x8x128xf32>
    %63 = arith.addf %54, %62 : vector<1x8x8x128xf32>
    %c4 = arith.constant 4 : index
    %c0_41 = arith.constant 0 : index
    %64 = vector.load %arg6[%c4, %c0_41] : memref<9x128xf32, #tpu.memory_space<vmem>>, vector<1x128xf32>
    %65 = vector.shape_cast %64 : vector<1x128xf32> to vector<128xf32>
    %66 = vector.shape_cast %65 : vector<128xf32> to vector<1x1x1x128xf32>
    %67 = vector.broadcast %66 : vector<1x1x1x128xf32> to vector<1x8x8x128xf32>
    %68 = arith.mulf %55, %67 : vector<1x8x8x128xf32>
    %69 = arith.addf %63, %68 : vector<1x8x8x128xf32>
    %70 = vector.extract_strided_slice %55 {offsets = [0, 1, 0, 0], sizes = [1, 7, 8, 128], strides = [1, 1, 1, 1]} : vector<1x8x8x128xf32> to vector<1x7x8x128xf32>
    %71 = tpu.concatenate %70, %30 in 1 : vector<1x7x8x128xf32>, vector<1x1x8x128xf32> -> vector<1x8x8x128xf32>
    %c7 = arith.constant 7 : index
    %c0_42 = arith.constant 0 : index
    %72 = vector.load %arg6[%c7, %c0_42] : memref<9x128xf32, #tpu.memory_space<vmem>>, vector<1x128xf32>
    %73 = vector.shape_cast %72 : vector<1x128xf32> to vector<128xf32>
    %74 = vector.shape_cast %73 : vector<128xf32> to vector<1x1x1x128xf32>
    %75 = vector.broadcast %74 : vector<1x1x1x128xf32> to vector<1x8x8x128xf32>
    %76 = arith.mulf %71, %75 : vector<1x8x8x128xf32>
    %77 = arith.addf %69, %76 : vector<1x8x8x128xf32>
    %c0_43 = arith.constant 0 : index
    %c0_44 = arith.constant 0 : index
    %c2 = arith.constant 2 : index
    %c0_45 = arith.constant 0 : index
    %78 = vector.load %arg17[%c0_43, %c0_44, %c2, %c0_45] : memref<1x8x16x128xf32, #tpu.memory_space<vmem>>, vector<1x8x8x128xf32>
    %79 = vector.extract_strided_slice %78 {offsets = [0, 0, 0, 0], sizes = [1, 7, 8, 128], strides = [1, 1, 1, 1]} : vector<1x8x8x128xf32> to vector<1x7x8x128xf32>
    %80 = tpu.concatenate %30, %79 in 1 : vector<1x1x8x128xf32>, vector<1x7x8x128xf32> -> vector<1x8x8x128xf32>
    %c2_46 = arith.constant 2 : index
    %c0_47 = arith.constant 0 : index
    %81 = vector.load %arg6[%c2_46, %c0_47] : memref<9x128xf32, #tpu.memory_space<vmem>>, vector<1x128xf32>
    %82 = vector.shape_cast %81 : vector<1x128xf32> to vector<128xf32>
    %83 = vector.shape_cast %82 : vector<128xf32> to vector<1x1x1x128xf32>
    %84 = vector.broadcast %83 : vector<1x1x1x128xf32> to vector<1x8x8x128xf32>
    %85 = arith.mulf %80, %84 : vector<1x8x8x128xf32>
    %86 = arith.addf %77, %85 : vector<1x8x8x128xf32>
    %c5 = arith.constant 5 : index
    %c0_48 = arith.constant 0 : index
    %87 = vector.load %arg6[%c5, %c0_48] : memref<9x128xf32, #tpu.memory_space<vmem>>, vector<1x128xf32>
    %88 = vector.shape_cast %87 : vector<1x128xf32> to vector<128xf32>
    %89 = vector.shape_cast %88 : vector<128xf32> to vector<1x1x1x128xf32>
    %90 = vector.broadcast %89 : vector<1x1x1x128xf32> to vector<1x8x8x128xf32>
    %91 = arith.mulf %78, %90 : vector<1x8x8x128xf32>
    %92 = arith.addf %86, %91 : vector<1x8x8x128xf32>
    %93 = vector.extract_strided_slice %78 {offsets = [0, 1, 0, 0], sizes = [1, 7, 8, 128], strides = [1, 1, 1, 1]} : vector<1x8x8x128xf32> to vector<1x7x8x128xf32>
    %94 = tpu.concatenate %93, %30 in 1 : vector<1x7x8x128xf32>, vector<1x1x8x128xf32> -> vector<1x8x8x128xf32>
    %c8 = arith.constant 8 : index
    %c0_49 = arith.constant 0 : index
    %95 = vector.load %arg6[%c8, %c0_49] : memref<9x128xf32, #tpu.memory_space<vmem>>, vector<1x128xf32>
    %96 = vector.shape_cast %95 : vector<1x128xf32> to vector<128xf32>
    %97 = vector.shape_cast %96 : vector<128xf32> to vector<1x1x1x128xf32>
    %98 = vector.broadcast %97 : vector<1x1x1x128xf32> to vector<1x8x8x128xf32>
    %99 = arith.mulf %94, %98 : vector<1x8x8x128xf32>
    %100 = arith.addf %92, %99 : vector<1x8x8x128xf32>
    %c0_50 = arith.constant 0 : index
    %c0_51 = arith.constant 0 : index
    %101 = vector.load %arg7[%c0_50, %c0_51] : memref<1x128xf32, #tpu.memory_space<vmem>>, vector<1x128xf32>
    %102 = vector.shape_cast %101 : vector<1x128xf32> to vector<1x1x1x128xf32>
    %103 = vector.broadcast %102 : vector<1x1x1x128xf32> to vector<1x8x8x128xf32>
    %104 = arith.addf %100, %103 : vector<1x8x8x128xf32>
    %105 = arith.negf %104 : vector<1x8x8x128xf32>
    %106 = math.exp %105 : vector<1x8x8x128xf32>
    %cst_52 = arith.constant 1.000000e+00 : f32
    %107 = vector.broadcast %cst_52 : f32 to vector<1x8x8x128xf32>
    %108 = arith.addf %107, %106 : vector<1x8x8x128xf32>
    %109 = arith.divf %107, %108 : vector<1x8x8x128xf32>
    %110 = arith.mulf %104, %109 : vector<1x8x8x128xf32>
    %111 = vector.shape_cast %110 : vector<1x8x8x128xf32> to vector<64x128xf32>
    %112 = vector.shape_cast %111 : vector<64x128xf32> to vector<1x64x128xf32>
    %cst_53 = arith.constant dense<0.000000e+00> : vector<1x128xf32>
    %113 = vector.multi_reduction <add>, %112, %cst_53 [1] : vector<1x64x128xf32> to vector<1x128xf32>
    %cst_54 = arith.constant 6.400000e+01 : f32
    %114 = vector.broadcast %cst_54 : f32 to vector<1x128xf32>
    %115 = arith.divf %113, %114 : vector<1x128xf32>
    %116 = vector.shape_cast %115 : vector<1x128xf32> to vector<1x1x128xf32>
    %c0_55 = arith.constant 0 : index
    %c0_56 = arith.constant 0 : index
    %117 = vector.load %arg8[%c0_55, %c0_56] : memref<8x128xf32, #tpu.memory_space<vmem>>, vector<8x128xf32>
    %118 = vector.shape_cast %117 : vector<8x128xf32> to vector<1x8x128xf32>
    %119 = vector.broadcast %116 : vector<1x1x128xf32> to vector<1x8x128xf32>
    %120 = arith.mulf %119, %118 : vector<1x8x128xf32>
    %cst_57 = arith.constant dense<0.000000e+00> : vector<1x8xf32>
    %121 = vector.multi_reduction <add>, %120, %cst_57 [2] : vector<1x8x128xf32> to vector<1x8xf32>
    %c0_58 = arith.constant 0 : index
    %c0_59 = arith.constant 0 : index
    %122 = vector.load %arg9[%c0_58, %c0_59] : memref<1x8xf32, #tpu.memory_space<vmem>>, vector<1x8xf32>
    %123 = arith.addf %121, %122 : vector<1x8xf32>
    %124 = arith.negf %123 : vector<1x8xf32>
    %125 = math.exp %124 : vector<1x8xf32>
    %cst_60 = arith.constant 1.000000e+00 : f32
    %126 = vector.broadcast %cst_60 : f32 to vector<1x8xf32>
    %127 = arith.addf %126, %125 : vector<1x8xf32>
    %128 = arith.divf %126, %127 : vector<1x8xf32>
    %129 = arith.mulf %123, %128 : vector<1x8xf32>
    %130 = vector.shape_cast %129 : vector<1x8xf32> to vector<1x8x1xf32>
    %c0_61 = arith.constant 0 : index
    %c0_62 = arith.constant 0 : index
    %131 = vector.load %arg10[%c0_61, %c0_62] : memref<8x128xf32, #tpu.memory_space<vmem>>, vector<8x128xf32>
    %132 = vector.shape_cast %131 : vector<8x128xf32> to vector<1x8x128xf32>
    %133 = vector.broadcast %130 : vector<1x8x1xf32> to vector<1x8x128xf32>
    %134 = arith.mulf %133, %132 : vector<1x8x128xf32>
    %cst_63 = arith.constant dense<0.000000e+00> : vector<1x128xf32>
    %135 = vector.multi_reduction <add>, %134, %cst_63 [1] : vector<1x8x128xf32> to vector<1x128xf32>
    %c0_64 = arith.constant 0 : index
    %c0_65 = arith.constant 0 : index
    %136 = vector.load %arg11[%c0_64, %c0_65] : memref<1x128xf32, #tpu.memory_space<vmem>>, vector<1x128xf32>
    %137 = arith.addf %135, %136 : vector<1x128xf32>
    %138 = arith.negf %137 : vector<1x128xf32>
    %139 = math.exp %138 : vector<1x128xf32>
    %cst_66 = arith.constant 1.000000e+00 : f32
    %140 = vector.broadcast %cst_66 : f32 to vector<1x128xf32>
    %141 = arith.addf %140, %139 : vector<1x128xf32>
    %142 = arith.divf %140, %141 : vector<1x128xf32>
    %143 = vector.shape_cast %111 : vector<64x128xf32> to vector<1x64x128xf32>
    %144 = vector.shape_cast %142 : vector<1x128xf32> to vector<1x1x128xf32>
    %145 = vector.broadcast %144 : vector<1x1x128xf32> to vector<1x64x128xf32>
    %146 = arith.mulf %143, %145 : vector<1x64x128xf32>
    %147 = vector.shape_cast %146 : vector<1x64x128xf32> to vector<64x128xf32>
    %148 = arith.truncf %147 : vector<64x128xf32> to vector<64x128xbf16>
    %c0_67 = arith.constant 0 : index
    %c0_68 = arith.constant 0 : index
    %149 = vector.load %arg12[%c0_67, %c0_68] : memref<128x128xbf16, #tpu.memory_space<vmem>>, vector<128x128xbf16>
    %cst_69 = arith.constant dense<0.000000e+00> : vector<64x128xf32>
    %150 = tpu.matmul %148, %149, %cst_69 {dimension_numbers = #tpu.dot_dimension_numbers<[1], [0], [0], [1], [0, 0, 1, 1], [], []>} : vector<64x128xbf16>, vector<128x128xbf16>, vector<64x128xf32> -> vector<64x128xf32>
    %c0_70 = arith.constant 0 : index
    %c0_71 = arith.constant 0 : index
    %151 = vector.load %arg13[%c0_70, %c0_71] : memref<1x128xf32, #tpu.memory_space<vmem>>, vector<1x128xf32>
    %152 = vector.broadcast %151 : vector<1x128xf32> to vector<64x128xf32>
    %153 = arith.addf %150, %152 : vector<64x128xf32>
    %154 = arith.addf %153, %12 : vector<64x128xf32>
    %155 = arith.truncf %154 : vector<64x128xf32> to vector<64x128xbf16>
    %c0_72 = arith.constant 0 : index
    %c0_73 = arith.constant 0 : index
    %156 = vector.load %arg14[%c0_72, %c0_73] : memref<128x128xbf16, #tpu.memory_space<vmem>>, vector<128x128xbf16>
    %cst_74 = arith.constant dense<0.000000e+00> : vector<64x128xf32>
    %157 = tpu.matmul %155, %156, %cst_74 {dimension_numbers = #tpu.dot_dimension_numbers<[1], [0], [0], [1], [0, 0, 1, 1], [], []>} : vector<64x128xbf16>, vector<128x128xbf16>, vector<64x128xf32> -> vector<64x128xf32>
    %c0_75 = arith.constant 0 : index
    %c0_76 = arith.constant 0 : index
    %158 = vector.load %arg15[%c0_75, %c0_76] : memref<1x128xf32, #tpu.memory_space<vmem>>, vector<1x128xf32>
    %159 = vector.broadcast %158 : vector<1x128xf32> to vector<64x128xf32>
    %160 = arith.addf %157, %159 : vector<64x128xf32>
    %161 = arith.negf %160 : vector<64x128xf32>
    %162 = math.exp %161 : vector<64x128xf32>
    %cst_77 = arith.constant 1.000000e+00 : f32
    %163 = vector.broadcast %cst_77 : f32 to vector<64x128xf32>
    %164 = arith.addf %163, %162 : vector<64x128xf32>
    %165 = arith.divf %163, %164 : vector<64x128xf32>
    %166 = arith.mulf %160, %165 : vector<64x128xf32>
    %167 = vector.shape_cast %166 : vector<64x128xf32> to vector<1x64x128xf32>
    %cst_78 = arith.constant dense<0.000000e+00> : vector<1x128xf32>
    %168 = vector.multi_reduction <add>, %167, %cst_78 [1] : vector<1x64x128xf32> to vector<1x128xf32>
    %cst_79 = arith.constant 6.400000e+01 : f32
    %169 = vector.broadcast %cst_79 : f32 to vector<1x128xf32>
    %170 = arith.divf %168, %169 : vector<1x128xf32>
    %c0_80 = arith.constant 0 : index
    %c0_81 = arith.constant 0 : index
    %c0_82 = arith.constant 0 : index
    %171 = vector.load %arg16[%c0_80, %c0_81, %c0_82] : memref<1x1x128xf32, #tpu.memory_space<vmem>>, vector<1x1x128xf32>
    %172 = vector.shape_cast %171 : vector<1x1x128xf32> to vector<1x128xf32>
    %173 = vector.shape_cast %170 : vector<1x128xf32> to vector<1x1x128xf32>
    tpu.vector_store %arg16[%c0_80, %c0_81, %c0_82], %173 {strides = array<i32>} : memref<1x1x128xf32, #tpu.memory_space<vmem>>, vector<1x1x128xf32>,
    return
  }
  func.func @transform_0(%arg0: i32) -> (i32, i32, i32, i32) {
    %c0_i32 = arith.constant 0 : i32
    %c0_i32_0 = arith.constant 0 : i32
    %c0_i32_1 = arith.constant 0 : i32
    %c0_i32_2 = arith.constant 0 : i32
    return %arg0, %c0_i32, %c0_i32_0, %c0_i32_1 : i32, i32, i32, i32
  }
  func.func @transform_1(%arg0: i32) -> (i32, i32) {
    %c0_i32 = arith.constant 0 : i32
    %c0_i32_0 = arith.constant 0 : i32
    %c0_i32_1 = arith.constant 0 : i32
    return %c0_i32, %c0_i32_0 : i32, i32
  }
  func.func @transform_2(%arg0: i32) -> (i32, i32) {
    %c0_i32 = arith.constant 0 : i32
    %c0_i32_0 = arith.constant 0 : i32
    %c0_i32_1 = arith.constant 0 : i32
    return %c0_i32, %c0_i32_0 : i32, i32
  }
  func.func @transform_3(%arg0: i32) -> (i32, i32) {
    %c0_i32 = arith.constant 0 : i32
    %c0_i32_0 = arith.constant 0 : i32
    %c0_i32_1 = arith.constant 0 : i32
    return %c0_i32, %c0_i32_0 : i32, i32
  }
  func.func @transform_4(%arg0: i32) -> (i32, i32) {
    %c0_i32 = arith.constant 0 : i32
    %c0_i32_0 = arith.constant 0 : i32
    %c0_i32_1 = arith.constant 0 : i32
    return %c0_i32, %c0_i32_0 : i32, i32
  }
  func.func @transform_5(%arg0: i32) -> (i32, i32) {
    %c0_i32 = arith.constant 0 : i32
    %c0_i32_0 = arith.constant 0 : i32
    %c0_i32_1 = arith.constant 0 : i32
    return %c0_i32, %c0_i32_0 : i32, i32
  }
  func.func @transform_6(%arg0: i32) -> (i32, i32) {
    %c0_i32 = arith.constant 0 : i32
    %c0_i32_0 = arith.constant 0 : i32
    %c0_i32_1 = arith.constant 0 : i32
    return %c0_i32, %c0_i32_0 : i32, i32
  }
  func.func @transform_7(%arg0: i32) -> (i32, i32) {
    %c0_i32 = arith.constant 0 : i32
    %c0_i32_0 = arith.constant 0 : i32
    %c0_i32_1 = arith.constant 0 : i32
    return %c0_i32, %c0_i32_0 : i32, i32
  }
  func.func @transform_8(%arg0: i32) -> (i32, i32) {
    %c0_i32 = arith.constant 0 : i32
    %c0_i32_0 = arith.constant 0 : i32
    %c0_i32_1 = arith.constant 0 : i32
    return %c0_i32, %c0_i32_0 : i32, i32
  }
  func.func @transform_9(%arg0: i32) -> (i32, i32) {
    %c0_i32 = arith.constant 0 : i32
    %c0_i32_0 = arith.constant 0 : i32
    %c0_i32_1 = arith.constant 0 : i32
    return %c0_i32, %c0_i32_0 : i32, i32
  }
  func.func @transform_10(%arg0: i32) -> (i32, i32) {
    %c0_i32 = arith.constant 0 : i32
    %c0_i32_0 = arith.constant 0 : i32
    %c0_i32_1 = arith.constant 0 : i32
    return %c0_i32, %c0_i32_0 : i32, i32
  }
  func.func @transform_11(%arg0: i32) -> (i32, i32) {
    %c0_i32 = arith.constant 0 : i32
    %c0_i32_0 = arith.constant 0 : i32
    %c0_i32_1 = arith.constant 0 : i32
    return %c0_i32, %c0_i32_0 : i32, i32
  }
  func.func @transform_12(%arg0: i32) -> (i32, i32) {
    %c0_i32 = arith.constant 0 : i32
    %c0_i32_0 = arith.constant 0 : i32
    %c0_i32_1 = arith.constant 0 : i32
    return %c0_i32, %c0_i32_0 : i32, i32
  }
  func.func @transform_13(%arg0: i32) -> (i32, i32) {
    %c0_i32 = arith.constant 0 : i32
    %c0_i32_0 = arith.constant 0 : i32
    %c0_i32_1 = arith.constant 0 : i32
    return %c0_i32, %c0_i32_0 : i32, i32
  }
  func.func @transform_14(%arg0: i32) -> (i32, i32) {
    %c0_i32 = arith.constant 0 : i32
    %c0_i32_0 = arith.constant 0 : i32
    %c0_i32_1 = arith.constant 0 : i32
    return %c0_i32, %c0_i32_0 : i32, i32
  }
  func.func @transform_15(%arg0: i32) -> (i32, i32, i32) {
    %c0_i32 = arith.constant 0 : i32
    %c0_i32_0 = arith.constant 0 : i32
    %c0_i32_1 = arith.constant 0 : i32
    return %arg0, %c0_i32, %c0_i32_0 : i32, i32, i32
  }
}

</mosaic_0001>

<bundles_post_ra>
// kernel: enetv2_forward.1
= control target key start
LH: loop header
LB: loop body
LE: loop exit
PB: predicated region body
PF: predicated region fallthrough
CT: control target
= control target key end

     0   :  { %s2152_s18 = smov 0   ;;  %s2531_s0 = inlined_call_operand.vmem [shape: bf16[2,8,8,27], index: 0, kind: input, shape index: {}]   ;;  %s2532_s1 = inlined_call_operand.vmem [shape: bf16[27,128], index: 1, kind: input, shape index: {}]   ;;  %s2533_s2 = inlined_call_operand.vmem [shape: f32[1,128], index: 2, kind: input, shape index: {}]   ;;  %s2534_s3 = inlined_call_operand.vmem [shape: bf16[128,128], index: 3, kind: input, shape index: {}]   ;;  %s2535_s4 = inlined_call_operand.vmem [shape: f32[1,128], index: 4, kind: input, shape index: {}]   ;;  %s2536_s5 = inlined_call_operand.vmem [shape: f32[9,128], index: 5, kind: input, shape index: {}]   ;;  %s2537_s6 = inlined_call_operand.vmem [shape: f32[1,128], index: 6, kind: input, shape index: {}]   ;;  %s2538_s7 = inlined_call_operand.vmem [shape: f32[8,128], index: 7, kind: input, shape index: {}]   ;;  %s2539_s8 = inlined_call_operand.vmem [shape: f32[1,8], index: 8, kind: input, shape index: {}]   ;;  %s2540_s9 = inlined_call_operand.vmem [shape: f32[8,128], index: 9, kind: input, shape index: {}]   ;;  %s2541_s10 = inlined_call_operand.vmem [shape: f32[1,128], index: 10, kind: input, shape index: {}]   ;;  %s2542_s11 = inlined_call_operand.vmem [shape: bf16[128,128], index: 11, kind: input, shape index: {}]   ;;  %s2543_s12 = inlined_call_operand.vmem [shape: f32[1,128], index: 12, kind: input, shape index: {}]   ;;  %s2544_s13 = inlined_call_operand.vmem [shape: bf16[128,128], index: 13, kind: input, shape index: {}]   ;;  %s2545_s14 = inlined_call_operand.vmem [shape: f32[1,128], index: 14, kind: input, shape index: {}]   ;;  %s2546_s15 = inlined_call_operand.vmem [shape: f32[2,1,128], index: 15, kind: output, shape index: {}]  }
   0x1 LB: > { %s1663_s19 = sadd.s32 4294967295, %s2067_s18   ;;  %p1667_p0 = scmp.ge.s32.totalorder %s2067_s18, 1  ;;  %s2067_s18 = sphi %s2152_s18, %s25_s18  }
   0x2   : > { %p437_p1 = scmp.lt.s32.totalorder %s2067_s18, 3 }
   0x4   : > { %p438_p2 = pnand %p1667_p0, %p437_p1 }
   0x6   : > { %441 = sbr.rel (%p438_p2) target bundleno = 1461 (0x5b5), region = 80 }
   0xd   : > { %v1895_v0 = vld [vmem:[%s2532_s1] sm:$0xff]   ;;  %vm555_vm0 = vcmask 1044480   ;;  %v1896_v1 = vld [vmem:[%s2532_s1 + $0x8] sm:$0x3f]   ;;  %vm556_vm1 = vcmask 1045504   ;;  %p483_p3 = scmp.lt.s32.totalorder %s1663_s19, 1 }
   0xe   : > { %1798 = vmatprep.subr.bf16.mxu0 %v1895_v0  ;;  %v2069_v2 = vmov 65535   ;;  %vm542_vm2 = vcmask 220160   ;;  %v1901_v10 = vld [vmem:[%s2534_s3] sm:$0xff]   ;;  %v1902_v11 = vld [vmem:[%s2534_s3 + $0x8] sm:$0xff]   ;;  %v1903_v12 = vld [vmem:[%s2534_s3 + $0x10] sm:$0xff]  }
   0xf   : > { %1799 = vmatpush3.bf16.msra.mxu0 %v1895_v0  ;;  %v557_v3 = vsel %vm555_vm0, 4294967295, %v2069_v2  ;;  %s2560_s19 = smov (!%p483_p3, %s1663_s19), 1  ;;  %1810 = vmatprep.subr.bf16.mxu1 %v1901_v10  ;;  %v1904_v13 = vld [vmem:[%s2534_s3 + $0x18] sm:$0xff]   ;;  %v1905_v14 = vld [vmem:[%s2534_s3 + $0x20] sm:$0xff]   ;;  %v1906_v15 = vld [vmem:[%s2534_s3 + $0x28] sm:$0xff]  }
  0x10   : > { %v558_v4 = vsel %vm556_vm1, %v557_v3, 0  ;;  %s1755_s24 = sshll.u32 %s2560_s19, 5  ;;  %1811 = vmatpush3.bf16.msra.mxu1 %v1901_v10  ;;  %v1907_v16 = vld [vmem:[%s2534_s3 + $0x30] sm:$0xff]   ;;  %v1908_v17 = vld [vmem:[%s2534_s3 + $0x38] sm:$0xff]   ;;  %v1670_v18 = vld [vmem:[%s2533_s2] ss:$0 sm:$0xff]  ;;  %s490_s23 = scalar_lea.vmem %s2546_s15, %s2560_s19 }
  0x11   : > { %v560_v5 = vand.u32 %v1896_v1, %v558_v4  ;;  %s487_s27 = scalar_lea.vmem %s2531_s0, %s1755_s24  ;;  %1812 = vmatprep.subr.bf16.mxu1 %v1902_v11 }
  0x12   : > { %v1897_v6 = vld [vmem:[%s487_s27] sm:$0xff]   ;;  %v1898_v7 = vld [vmem:[%s487_s27 + $0x8] sm:$0xff]   ;;  %v1899_v8 = vld [vmem:[%s487_s27 + $0x10] sm:$0xff]  }
  0x13   : > { %1800 = vmatprep.subr.bf16.mxu0 %v560_v5  ;;  %1802 = vmatprep.mubr.msk.bf16.mxu0 %vm542_vm2, %v1897_v6  ;;  %v1900_v9 = vld [vmem:[%s487_s27 + $0x18] sm:$0xff]  }
  0x14   : > { %1801 = vmatpush3.bf16.msra.mxu0 %v560_v5  ;;  %1813 = vmatpush3.bf16.msra.mxu1 %v1902_v11 }
  0x15   : > { %1814 = vmatprep.subr.bf16.mxu1 %v1903_v12 }
  0x17   : > { %1803 = vmatmul.mubr.msk.bf16.vlgmr.msra.gmra.mrb[0].mxu0 %vm542_vm2, %v1898_v7 }
  0x18   : > { %1806 = vmatprep.mubr.msk.bf16.mxu0 %vm542_vm2, %v1899_v8  ;;  %1815 = vmatpush3.bf16.msra.mxu1 %v1903_v12 }
  0x19   : > { %1816 = vmatprep.subr.bf16.mxu1 %v1904_v13 }
  0x1c   : > { %1817 = vmatpush3.bf16.msra.mxu1 %v1904_v13 }
  0x1d   : > { %1818 = vmatprep.subr.bf16.mxu1 %v1905_v14 }
  0x1f   : > { %1807 = vmatmul.mubr.msk.bf16.gmra.mrb[4].mxu0 %vm542_vm2, %v1900_v9 }
  0x20   : > { %1819 = vmatpush3.bf16.msra.mxu1 %v1905_v14 }
  0x21   : > { %1820 = vmatprep.subr.bf16.mxu1 %v1906_v15 }
  0x24   : > { %1821 = vmatpush3.bf16.msra.mxu1 %v1906_v15  ;;  %v2070_v15 = vmov 0.0  }
  0x25   : > { %1822 = vmatprep.subr.bf16.mxu1 %v1907_v16  ;;  %881 = vst [vmem:[#allocation2 + $0x20] sm:$0x1] %v2070_v15  ;;  %879 = vst [vmem:[#allocation2] sm:$0x1] %v2070_v15 }
  0x26   : > { %880 = vst [vmem:[#allocation2 + $0x10] sm:$0x1] %v2070_v15  ;;  %882 = vst [vmem:[#allocation2 + $0x30] sm:$0x1] %v2070_v15 }
  0x27   : > { %883 = vst [vmem:[#allocation2 + $0x40] sm:$0x1] %v2070_v15  ;;  %884 = vst [vmem:[#allocation2 + $0x50] sm:$0x1] %v2070_v15 }
  0x28   : > { %1823 = vmatpush3.bf16.msra.mxu1 %v1907_v16  ;;  %885 = vst [vmem:[#allocation2 + $0x60] sm:$0x1] %v2070_v15  ;;  %886 = vst [vmem:[#allocation2 + $0x70] sm:$0x1] %v2070_v15  ;;  %v1689_v16 = vld [vmem:[%s2535_s4] ss:$0 sm:$0xff] }
  0x29   : > { %1824 = vmatprep.subr.bf16.mxu1 %v1908_v17  ;;  %887 = vst [vmem:[#allocation2 + $0x9] sm:$0x1] %v2070_v15  ;;  %888 = vst [vmem:[#allocation2 + $0x19] sm:$0x1] %v2070_v15 }
  0x2a   : > { %889 = vst [vmem:[#allocation2 + $0x29] sm:$0x1] %v2070_v15  ;;  %890 = vst [vmem:[#allocation2 + $0x39] sm:$0x1] %v2070_v15 }
  0x2b   : > { %891 = vst [vmem:[#allocation2 + $0x49] sm:$0x1] %v2070_v15  ;;  %892 = vst [vmem:[#allocation2 + $0x59] sm:$0x1] %v2070_v15 }
  0x2c   : > { %1825 = vmatpush3.bf16.msra.mxu1 %v1908_v17  ;;  %893 = vst [vmem:[#allocation2 + $0x69] sm:$0x1] %v2070_v15  ;;  %894 = vst [vmem:[#allocation2 + $0x79] sm:$0x1] %v2070_v15 }
  0xea   : > { %v1804_v19 = vpop.f32.mrb[0].mxu0 }
  0xeb   : > { %v605_v20 = vadd.f32 %v1804_v19, %v1670_v18  ;;  %v596_v21 = vpop.f32.mrb[1].mxu0 }
  0xec   : > { %v597_v22 = vadd.f32 %v1670_v18, %v596_v21  ;;  %v1805_v23 = vpop.f32.mrb[2].mxu0 }
  0xed   : > { %v1683_v24 = vmul.f32 -1.442695, %v605_v20  ;;  %v608_v25 = vadd.f32 %v1805_v23, %v1670_v18  ;;  %v599_v26 = vpop.f32.mrb[3].mxu0 }
  0xee   : > { %v1681_v27 = vmul.f32 -1.442695, %v597_v22  ;;  %v600_v28 = vadd.f32 %v1670_v18, %v599_v26 }
  0xef   : > { %1925 = vpow2.f32 %v1683_v24  ;;  %v1684_v29 = vmul.f32 -1.442695, %v608_v25 }
  0xf0   : > { %1927 = vpow2.f32 %v1681_v27  ;;  %v1682_v30 = vmul.f32 -1.442695, %v600_v28 }
  0xf1   : > { %1929 = vpow2.f32 %v1684_v29 }
  0xf2   : > { %1931 = vpow2.f32 %v1682_v30  ;;  %v1808_v31 = vpop.f32.mrb[4].mxu0 }
  0xf3   : > { %v621_v32 = vadd.f32 %v1808_v31, %v1670_v18  ;;  %v612_v33 = vpop.f32.mrb[5].mxu0 }
  0xf4   : > { %v613_v34 = vadd.f32 %v1670_v18, %v612_v33  ;;  %v1809_v35 = vpop.f32.mrb[6].mxu0 }
  0xf5   : > { %v1687_v36 = vmul.f32 -1.442695, %v621_v32  ;;  %v624_v37 = vadd.f32 %v1809_v35, %v1670_v18  ;;  %v615_v38 = vpop.f32.mrb[7].mxu0 }
  0xf6   : > { %v1685_v39 = vmul.f32 -1.442695, %v613_v34  ;;  %v616_v40 = vadd.f32 %v1670_v18, %v615_v38 }
  0xf7   : > { %1933 = vpow2.f32 %v1687_v36  ;;  %v1688_v41 = vmul.f32 -1.442695, %v624_v37 }
  0xf8   : > { %1935 = vpow2.f32 %v1685_v39  ;;  %v1686_v42 = vmul.f32 -1.442695, %v616_v40 }
  0xf9   : > { %v1926_v43 = vpop.eup %1925  ;;  %1937 = vpow2.f32 %v1688_v41 }
  0xfa   : > { %v1928_v44 = vpop.eup %1927  ;;  %v653_v45 = vadd.f32 1.0, %v1926_v43  ;;  %1939 = vpow2.f32 %v1686_v42 }
  0xfb   : > { %v1930_v46 = vpop.eup %1929  ;;  %v651_v47 = vadd.f32 1.0, %v1928_v44 }
  0xfc   : > { %v1932_v48 = vpop.eup %1931  ;;  %1941 = vrcp.f32 %v653_v45  ;;  %v654_v49 = vadd.f32 1.0, %v1930_v46 }
  0xfd   : > { %1943 = vrcp.f32 %v651_v47  ;;  %v652_v50 = vadd.f32 1.0, %v1932_v48 }
  0xfe   : > { %1945 = vrcp.f32 %v654_v49 }
  0xff   : > { %1947 = vrcp.f32 %v652_v50 }
 0x101   : > { %v1934_v51 = vpop.eup %1933 }
 0x102   : > { %v1936_v52 = vpop.eup %1935  ;;  %v657_v53 = vadd.f32 1.0, %v1934_v51 }
 0x103   : > { %v1938_v54 = vpop.eup %1937  ;;  %v655_v55 = vadd.f32 1.0, %v1936_v52 }
 0x104   : > { %v1940_v56 = vpop.eup %1939  ;;  %1949 = vrcp.f32 %v657_v53  ;;  %v658_v57 = vadd.f32 1.0, %v1938_v54 }
 0x105   : > { %1951 = vrcp.f32 %v655_v55  ;;  %v656_v58 = vadd.f32 1.0, %v1940_v56 }
 0x106   : > { %v1942_v59 = vpop.eup %1941  ;;  %1953 = vrcp.f32 %v658_v57 }
 0x107   : > { %v1944_v60 = vpop.eup %1943  ;;  %1955 = vrcp.f32 %v656_v58  ;;  %v2205_v2 = vmul.f32 %v1942_v59, %v605_v20 }
 0x108   : > { %v1946_v61 = vpop.eup %1945  ;;  %v2201_v0 = vmul.f32 %v1944_v60, %v597_v22 }
 0x109   : > { %v1948_v62 = vpop.eup %1947  ;;  %v2199_v63 = vmul.f32 %v1946_v61, %v608_v25  ;;  %v2241_v61 = vld [vmem:[%s2536_s5] ss:$0 sm:$0xff] }
 0x10a   : > { %v2203_v1 = vmul.f32 %v1948_v62, %v600_v28 }
 0x10b   : > { %v684_v4 = vpack.c.bf16 %v2199_v63, %v2205_v2 }
 0x10c   : > { %v683_v3 = vpack.c.bf16 %v2203_v1, %v2201_v0 }
 0x10e   : > { %v1950_v5 = vpop.eup %1949  ;;  %1826 = vmatprep.mubr.bf16.mxu1 %v683_v3 }
 0x10f   : > { %v1952_v6 = vpop.eup %1951  ;;  %1827 = vmatmul.mubr.bf16.vlgmr.msra.gmra.mrb[0].mxu1 %v684_v4  ;;  %v2217_v12 = vmul.f32 %v1950_v5, %v621_v32  ;;  %v1709_v5 = vld [vmem:[%s2536_s5 + $0x1] ss:$0 sm:$0xff] }
 0x110   : > { %v1954_v7 = vpop.eup %1953  ;;  %v2213_v10 = vmul.f32 %v1952_v6, %v613_v34  ;;  %v2249_v6 = vld [vmem:[%s2536_s5 + $0x4] ss:$0 sm:$0xff] }
 0x111   : > { %v1956_v8 = vpop.eup %1955  ;;  %v2211_v9 = vmul.f32 %v1954_v7, %v624_v37  ;;  %2554 = vst [vmem:[#allocation6_spill] sm:$0xff] %v2217_v12 }
 0x112   : > { %2552 = vst [vmem:[#allocation4_spill] sm:$0xff] %v2213_v10  ;;  %v2215_v11 = vmul.f32 %v1956_v8, %v616_v40  ;;  %v2254_v8 = vld [vmem:[%s2536_s5 + $0x6] ss:$0 sm:$0xff] }
 0x113   : > { %2551 = vst [vmem:[#allocation3_spill] sm:$0xff] %v2211_v9  ;;  %v686_v14 = vpack.c.bf16 %v2211_v9, %v2217_v12  ;;  %v2263_v15 = vmul.f32 0.0, %v2254_v8 }
 0x114   : > { %2553 = vst [vmem:[#allocation5_spill] sm:$0xff] %v2215_v11  ;;  %v685_v13 = vpack.c.bf16 %v2215_v11, %v2213_v10 }
 0x116   : > { %1830 = vmatprep.mubr.bf16.mxu1 %v685_v13  ;;  %v916_v13 = vmul.f32 0.0, %v2241_v61 }
 0x117   : > { %1831 = vmatmul.mubr.bf16.gmra.mrb[4].mxu1 %v686_v14  ;;  %v2260_v14 = vld [vmem:[%s2536_s5 + $0x7] ss:$0 sm:$0xff] }
 0x1e2   : > { %v1828_v17 = vpop.f32.mrb[0].mxu1 }
 0x1e3   : > { %v801_v18 = vadd.f32 %v1828_v17, %v1689_v16  ;;  %v792_v19 = vpop.f32.mrb[1].mxu1  ;;  %v2270_v17 = vld [vmem:[%s2536_s5 + $0x2] ss:$0 sm:$0xff] }
 0x1e4   : > { %v793_v20 = vadd.f32 %v1689_v16, %v792_v19  ;;  %v1829_v21 = vpop.f32.mrb[2].mxu1 }
 0x1e5   : > { %v1700_v22 = vmul.f32 -1.442695, %v801_v18  ;;  %v804_v23 = vadd.f32 %v1829_v21, %v1689_v16  ;;  %v795_v24 = vpop.f32.mrb[3].mxu1  ;;  %v2283_v21 = vmul.f32 0.0, %v2270_v17 }
 0x1e6   : > { %v1698_v25 = vmul.f32 -1.442695, %v793_v20  ;;  %v796_v26 = vadd.f32 %v1689_v16, %v795_v24  ;;  %v2291_v24 = vld [vmem:[%s2536_s5 + $0x3] ss:$0 sm:$0xff] }
 0x1e7   : > { %1957 = vpow2.f32 %v1700_v22  ;;  %v1701_v27 = vmul.f32 -1.442695, %v804_v23 }
 0x1e8   : > { %1959 = vpow2.f32 %v1698_v25  ;;  %v1699_v28 = vmul.f32 -1.442695, %v796_v26 }
 0x1e9   : > { %1961 = vpow2.f32 %v1701_v27 }
 0x1ea   : > { %1963 = vpow2.f32 %v1699_v28  ;;  %v1832_v29 = vpop.f32.mrb[4].mxu1 }
 0x1eb   : > { %v2226_v30 = vadd.f32 %v1832_v29, %v1689_v16  ;;  %v808_v31 = vpop.f32.mrb[5].mxu1 }
 0x1ec   : > { %v2228_v32 = vadd.f32 %v1689_v16, %v808_v31  ;;  %v1833_v33 = vpop.f32.mrb[6].mxu1 }
 0x1ed   : > { %v1704_v34 = vmul.f32 -1.442695, %v2226_v30  ;;  %v2231_v35 = vadd.f32 %v1833_v33, %v1689_v16  ;;  %v811_v36 = vpop.f32.mrb[7].mxu1 }
 0x1ee   : > { %v1702_v37 = vmul.f32 -1.442695, %v2228_v32  ;;  %v2234_v38 = vadd.f32 %v1689_v16, %v811_v36  ;;  %v2265_v16 = vmul.f32 0.0, %v1709_v5 }
 0x1ef   : > { %1965 = vpow2.f32 %v1704_v34  ;;  %v1705_v39 = vmul.f32 -1.442695, %v2231_v35 }
 0x1f0   : > { %1967 = vpow2.f32 %v1702_v37  ;;  %v1703_v40 = vmul.f32 -1.442695, %v2234_v38 }
 0x1f1   : > { %v1958_v41 = vpop.eup %1957  ;;  %1969 = vpow2.f32 %v1705_v39 }
 0x1f2   : > { %v1960_v42 = vpop.eup %1959  ;;  %v849_v43 = vadd.f32 1.0, %v1958_v41  ;;  %1971 = vpow2.f32 %v1703_v40 }
 0x1f3   : > { %v1962_v44 = vpop.eup %1961  ;;  %v847_v45 = vadd.f32 1.0, %v1960_v42 }
 0x1f4   : > { %v1964_v46 = vpop.eup %1963  ;;  %1973 = vrcp.f32 %v849_v43  ;;  %v850_v47 = vadd.f32 1.0, %v1962_v44 }
 0x1f5   : > { %1975 = vrcp.f32 %v847_v45  ;;  %v848_v48 = vadd.f32 1.0, %v1964_v46 }
 0x1f6   : > { %1977 = vrcp.f32 %v850_v47 }
 0x1f7   : > { %1979 = vrcp.f32 %v848_v48 }
 0x1f9   : > { %v1966_v49 = vpop.eup %1965 }
 0x1fa   : > { %v1968_v50 = vpop.eup %1967  ;;  %v853_v51 = vadd.f32 1.0, %v1966_v49 }
 0x1fb   : > { %v1970_v52 = vpop.eup %1969  ;;  %v851_v53 = vadd.f32 1.0, %v1968_v50 }
 0x1fc   : > { %v1972_v54 = vpop.eup %1971  ;;  %1981 = vrcp.f32 %v853_v51  ;;  %v854_v55 = vadd.f32 1.0, %v1970_v52 }
 0x1fd   : > { %1983 = vrcp.f32 %v851_v53  ;;  %v852_v56 = vadd.f32 1.0, %v1972_v54 }
 0x1fe   : > { %v1974_v57 = vpop.eup %1973  ;;  %1985 = vrcp.f32 %v854_v55 }
 0x1ff   : > { %v1976_v58 = vpop.eup %1975  ;;  %v873_v59 = vmul.f32 %v1974_v57, %v801_v18  ;;  %1987 = vrcp.f32 %v852_v56  ;;  %v2275_v18 = vld [vmem:[%s2536_s5 + $0x8] ss:$0 sm:$0xff] }
 0x200   : > { %v1978_v60 = vpop.eup %1977  ;;  %v871_v62 = vmul.f32 %v1976_v58, %v793_v20  ;;  %v2280_v20 = vmul.f32 0.0, %v2260_v14  ;;  %v2286_v22 = vmul.f32 0.0, %v2275_v18 }
 0x201   : > { %v1980_v3 = vpop.eup %1979  ;;  %897 = vst [vmem:[#allocation2 + $0x21] sm:$0xff] %v873_v59  ;;  %v874_v4 = vmul.f32 %v1978_v60, %v804_v23  ;;  %v2277_v19 = vmul.f32 %v1709_v5, %v873_v59  ;;  %v2299_v27 = vmul.f32 %v2249_v6, %v873_v59  ;;  %v2302_v28 = vmul.f32 %v2260_v14, %v873_v59 }
 0x202   : > { %895 = vst [vmem:[#allocation2 + $0x1] sm:$0xff] %v871_v62  ;;  %v872_v7 = vmul.f32 %v1980_v3, %v796_v26  ;;  %v2293_v25 = vmul.f32 %v1709_v5, %v871_v62  ;;  %v2296_v26 = vmul.f32 %v2249_v6, %v871_v62 }
 0x203   : > { %898 = vst [vmem:[#allocation2 + $0x31] sm:$0xff] %v874_v4  ;;  %v2305_v33 = vmul.f32 %v1709_v5, %v874_v4  ;;  %v2308_v34 = vmul.f32 %v2249_v6, %v874_v4  ;;  %v2311_v36 = vmul.f32 %v2260_v14, %v874_v4 }
 0x204   : > { %896 = vst [vmem:[#allocation2 + $0x11] sm:$0xff] %v872_v7  ;;  %v989_v41 = vmul.f32 %v1709_v5, %v872_v7  ;;  %v2315_v42 = vmul.f32 %v2249_v6, %v872_v7  ;;  %v2318_v43 = vmul.f32 %v2260_v14, %v872_v7 }
 0x206   : > { %v1982_v23 = vpop.eup %1981 }
 0x207   : > { %v1984_v29 = vpop.eup %1983  ;;  %v877_v31 = vmul.f32 %v1982_v23, %v2226_v30 }
 0x208   : > { %v1986_v37 = vpop.eup %1985  ;;  %v905_v39 = vld [vmem:[#allocation2 + $0x20] sm:$0xff]  ;;  %v875_v40 = vmul.f32 %v1984_v29, %v2228_v32 }
 0x209   : > { %v1988_v30 = vpop.eup %1987  ;;  %v919_v44 = vmul.f32 %v2241_v61, %v905_v39  ;;  %v939_v45 = vmul.f32 %v2291_v24, %v905_v39  ;;  %v959_v46 = vmul.f32 %v2254_v8, %v905_v39  ;;  %v903_v47 = vld [vmem:[#allocation2] sm:$0xff]  ;;  %901 = vst [vmem:[#allocation2 + $0x61] sm:$0xff] %v877_v31  ;;  %v878_v48 = vmul.f32 %v1986_v37, %v2231_v35 }
 0x20a   : > { %v917_v32 = vmul.f32 %v2241_v61, %v903_v47  ;;  %v937_v49 = vmul.f32 %v2291_v24, %v903_v47  ;;  %v906_v50 = vld [vmem:[#allocation2 + $0x30] sm:$0xff]  ;;  %899 = vst [vmem:[#allocation2 + $0x41] sm:$0xff] %v875_v40  ;;  %v876_v51 = vmul.f32 %v1988_v30, %v2234_v38  ;;  %v2327_v52 = vmul.f32 %v1709_v5, %v875_v40  ;;  %v2348_v37 = vld [vmem:[#allocation2 + $0x2] sm:$0xff] }
 0x20b   : > { %v940_v53 = vmul.f32 %v2291_v24, %v906_v50  ;;  %v960_v54 = vmul.f32 %v2254_v8, %v906_v50  ;;  %v904_v55 = vld [vmem:[#allocation2 + $0x10] sm:$0xff]  ;;  %902 = vst [vmem:[#allocation2 + $0x71] sm:$0xff] %v878_v48  ;;  %v920_v56 = vmul.f32 %v2241_v61, %v906_v50  ;;  %v2332_v57 = vmul.f32 %v1709_v5, %v877_v31 }
 0x20c   : > { %v945_v35 = vadd.f32 %v937_v49, %v916_v13  ;;  %v918_v58 = vmul.f32 %v2241_v61, %v904_v55  ;;  %v938_v59 = vmul.f32 %v2291_v24, %v904_v55  ;;  %v958_v60 = vmul.f32 %v2254_v8, %v904_v55  ;;  %900 = vst [vmem:[#allocation2 + $0x51] sm:$0xff] %v876_v51 }
 0x20d   : > { %v948_v38 = vadd.f32 %v940_v53, %v919_v44  ;;  %v2337_v62 = vmul.f32 %v1709_v5, %v876_v51  ;;  %v2340_v3 = vmul.f32 %v2249_v6, %v875_v40  ;;  %v2343_v4 = vmul.f32 %v2249_v6, %v876_v51 }
 0x20e   : > { %v946_v7 = vadd.f32 %v938_v59, %v917_v32  ;;  %v947_v23 = vadd.f32 %v939_v45, %v918_v58  ;;  %v966_v29 = vadd.f32 %v958_v60, %v945_v35  ;;  %v2346_v13 = vmul.f32 %v2249_v6, %v877_v31 }
 0x20f   : > { %v1015_v39 = vmul.f32 %v2249_v6, %v878_v48  ;;  %v1032_v30 = vmul.f32 %v2260_v14, %v875_v40  ;;  %v2353_v5 = vmul.f32 %v2260_v14, %v876_v51  ;;  %v2356_v44 = vmul.f32 %v2260_v14, %v877_v31 }
 0x210   : > { %v909_v47 = vld [vmem:[#allocation2 + $0x60] sm:$0xff]  ;;  %v967_v49 = vadd.f32 %v959_v46, %v946_v7  ;;  %v968_v32 = vadd.f32 %v960_v54, %v947_v23  ;;  %v995_v45 = vadd.f32 %v2265_v16, %v966_v29  ;;  %v2360_v50 = vmul.f32 %v2260_v14, %v878_v48 }
 0x211   : > { %v907_v53 = vld [vmem:[#allocation2 + $0x40] sm:$0xff]  ;;  %v923_v55 = vmul.f32 %v2241_v61, %v909_v47  ;;  %v943_v6 = vmul.f32 %v2291_v24, %v909_v47  ;;  %v963_v40 = vmul.f32 %v2254_v8, %v909_v47  ;;  %v1059_v51 = vmul.f32 %v2270_v17, %v2348_v37 }
 0x212   : > { %v910_v31 = vld [vmem:[#allocation2 + $0x70] sm:$0xff]  ;;  %v921_v35 = vmul.f32 %v2241_v61, %v907_v53  ;;  %v941_v46 = vmul.f32 %v2291_v24, %v907_v53  ;;  %v961_v16 = vmul.f32 %v2254_v8, %v907_v53  ;;  %v996_v14 = vadd.f32 %v2293_v25, %v967_v49 }
 0x213   : > { %v908_v48 = vld [vmem:[#allocation2 + $0x50] sm:$0xff]  ;;  %v944_v54 = vmul.f32 %v2291_v24, %v910_v31  ;;  %v964_v58 = vmul.f32 %v2254_v8, %v910_v31  ;;  %v997_v59 = vadd.f32 %v989_v41, %v968_v32  ;;  %v1016_v60 = vadd.f32 %v2296_v26, %v995_v45  ;;  %v1047_v26 = vld [vmem:[#allocation2 + $0x22] sm:$0xff] }
 0x214   : > { %v922_v7 = vmul.f32 %v2241_v61, %v908_v48  ;;  %v942_v23 = vmul.f32 %v2291_v24, %v908_v48  ;;  %v949_v29 = vadd.f32 %v941_v46, %v920_v56  ;;  %v962_v47 = vmul.f32 %v2254_v8, %v908_v48  ;;  %v1046_v49 = vld [vmem:[#allocation2 + $0x12] sm:$0xff] }
 0x215   : > { %v952_v11 = vadd.f32 %v944_v54, %v923_v55  ;;  %v969_v10 = vadd.f32 %v961_v16, %v948_v38  ;;  %v1017_v53 = vadd.f32 %v2315_v42, %v996_v14  ;;  %v1018_v25 = vadd.f32 %v2299_v27, %v997_v59  ;;  %v1048_v32 = vld [vmem:[#allocation2 + $0x32] sm:$0xff]  ;;  %v1049_v38 = vld [vmem:[#allocation2 + $0x42] sm:$0xff] }
 0x216   : > { %v950_v9 = vadd.f32 %v942_v23, %v921_v35  ;;  %v951_v12 = vadd.f32 %v943_v6, %v922_v7  ;;  %v970_v31 = vadd.f32 %v962_v47, %v949_v29  ;;  %v1037_v41 = vadd.f32 %v2318_v43, %v1016_v60  ;;  %v1050_v55 = vld [vmem:[#allocation2 + $0x52] sm:$0xff]  ;;  %v1051_v6 = vld [vmem:[#allocation2 + $0x62] sm:$0xff] }
 0x217   : > { %v973_v61 = vadd.f32 %v2263_v15, %v952_v11  ;;  %v998_v24 = vadd.f32 %v2277_v19, %v969_v10  ;;  %v1038_v8 = vadd.f32 %v2302_v28, %v1017_v53  ;;  %v1039_v56 = vadd.f32 %v2311_v36, %v1018_v25  ;;  %v1052_v54 = vld [vmem:[#allocation2 + $0x72] sm:$0xff] }
 0x218   : > { %v971_v42 = vadd.f32 %v963_v40, %v950_v9  ;;  %v972_v45 = vadd.f32 %v964_v58, %v951_v12  ;;  %v999_v27 = vadd.f32 %v2305_v33, %v970_v31  ;;  %v1060_v35 = vmul.f32 %v2270_v17, %v1046_v49 }
 0x219   : > { %v1002_v43 = vadd.f32 %v2332_v57, %v973_v61  ;;  %v1019_v46 = vadd.f32 %v2308_v34, %v998_v24  ;;  %v1061_v11 = vmul.f32 %v2270_v17, %v1047_v26  ;;  %v1062_v10 = vmul.f32 %v2270_v17, %v1048_v32  ;;  %v1713_v34 = vld [vmem:[%s2536_s5 + $0x5] ss:$0 sm:$0xff] }
 0x21a   : > { %v1000_v15 = vadd.f32 %v2327_v52, %v971_v42  ;;  %v1001_v19 = vadd.f32 %v2337_v62, %v972_v45  ;;  %v1020_v9 = vadd.f32 %v2340_v3, %v999_v27  ;;  %v1063_v12 = vmul.f32 %v2270_v17, %v1049_v38  ;;  %v1715_v27 = vld [vmem:[%s2537_s6] ss:$0 sm:$0xff] }
 0x21b   : > { %v1023_v28 = vadd.f32 %v1015_v39, %v1002_v43  ;;  %v1040_v33 = vadd.f32 %v1032_v30, %v1019_v46  ;;  %v1064_v36 = vmul.f32 %v2270_v17, %v1050_v55  ;;  %v1065_v57 = vmul.f32 %v2270_v17, %v1051_v6 }
 0x21c   : > { %v1021_v40 = vadd.f32 %v2343_v4, %v1000_v15  ;;  %v1022_v52 = vadd.f32 %v2346_v13, %v1001_v19  ;;  %v1041_v62 = vadd.f32 %v2353_v5, %v1020_v9  ;;  %v1066_v3 = vadd.f32 %v2283_v21, %v1037_v41 }
 0x21d   : > { %v1044_v16 = vadd.f32 %v2280_v20, %v1023_v28  ;;  %v1067_v39 = vadd.f32 %v1059_v51, %v1038_v8  ;;  %v1068_v30 = vadd.f32 %v1060_v35, %v1039_v56  ;;  %v1069_v14 = vadd.f32 %v1061_v11, %v1040_v33 }
 0x21e   : > { %v1042_v48 = vadd.f32 %v2356_v44, %v1021_v40  ;;  %v1043_v17 = vadd.f32 %v2360_v50, %v1022_v52  ;;  %v1070_v58 = vadd.f32 %v1062_v10, %v1041_v62  ;;  %v1079_v59 = vmul.f32 %v1713_v34, %v2348_v37 }
 0x21f   : > { %v1073_v4 = vadd.f32 %v1065_v57, %v1044_v16  ;;  %v1080_v60 = vmul.f32 %v1713_v34, %v1046_v49  ;;  %v1081_v13 = vmul.f32 %v1713_v34, %v1047_v26  ;;  %v1082_v7 = vmul.f32 %v1713_v34, %v1048_v32 }
 0x220   : > { %v1071_v5 = vadd.f32 %v1063_v12, %v1042_v48  ;;  %v1072_v23 = vadd.f32 %v1064_v36, %v1043_v17  ;;  %v1083_v21 = vmul.f32 %v1713_v34, %v1049_v38  ;;  %v1084_v29 = vmul.f32 %v1713_v34, %v1050_v55 }
 0x221   : > { %v1085_v20 = vmul.f32 %v1713_v34, %v1051_v6  ;;  %v1086_v51 = vmul.f32 %v1713_v34, %v1052_v54  ;;  %v1087_v47 = vadd.f32 %v1079_v59, %v1066_v3  ;;  %v1088_v53 = vadd.f32 %v1080_v60, %v1067_v39 }
 0x222   : > { %v1089_v25 = vadd.f32 %v1081_v13, %v1068_v30  ;;  %v1090_v44 = vadd.f32 %v1082_v7, %v1069_v14  ;;  %v1091_v31 = vadd.f32 %v1083_v21, %v1070_v58  ;;  %v1092_v50 = vadd.f32 %v1084_v29, %v1071_v5 }
 0x223   : > { %v1093_v41 = vadd.f32 %v1085_v20, %v1072_v23  ;;  %v1094_v61 = vadd.f32 %v1086_v51, %v1073_v4  ;;  %v1100_v37 = vmul.f32 %v2275_v18, %v1046_v49  ;;  %v1101_v24 = vmul.f32 %v2275_v18, %v1047_v26 }
 0x224   : > { %v1102_v8 = vmul.f32 %v2275_v18, %v1048_v32  ;;  %v1103_v56 = vmul.f32 %v2275_v18, %v1049_v38  ;;  %v1104_v42 = vmul.f32 %v2275_v18, %v1050_v55  ;;  %v1105_v45 = vmul.f32 %v2275_v18, %v1051_v6 }
 0x225   : > { %v1106_v35 = vmul.f32 %v2275_v18, %v1052_v54  ;;  %v1108_v43 = vadd.f32 %v1100_v37, %v1087_v47  ;;  %v1109_v46 = vadd.f32 %v1101_v24, %v1088_v53  ;;  %v1115_v49 = vadd.f32 %v2286_v22, %v1094_v61 }
 0x226   : > { %v1110_v11 = vadd.f32 %v1102_v8, %v1089_v25  ;;  %v1111_v26 = vadd.f32 %v1103_v56, %v1090_v44  ;;  %v1112_v10 = vadd.f32 %v1104_v42, %v1091_v31  ;;  %v1113_v32 = vadd.f32 %v1105_v45, %v1092_v50 }
 0x227   : > { %v1114_v15 = vadd.f32 %v1106_v35, %v1093_v41  ;;  %v1123_v38 = vadd.f32 %v1715_v27, %v1108_v43  ;;  %v1124_v19 = vadd.f32 %v1715_v27, %v1109_v46  ;;  %v1130_v57 = vadd.f32 %v1715_v27, %v1115_v49 }
 0x228   : > { %v1125_v55 = vadd.f32 %v1715_v27, %v1110_v11  ;;  %v1126_v9 = vadd.f32 %v1715_v27, %v1111_v26  ;;  %v1127_v6 = vadd.f32 %v1715_v27, %v1112_v10  ;;  %v1128_v12 = vadd.f32 %v1715_v27, %v1113_v32 }
 0x229   : > { %v1129_v28 = vadd.f32 %v1715_v27, %v1114_v15  ;;  %v1716_v33 = vmul.f32 -1.442695, %v1123_v38  ;;  %v1717_v36 = vmul.f32 -1.442695, %v1124_v19  ;;  %v1723_v62 = vmul.f32 -1.442695, %v1130_v57 }
 0x22a   : > { %v1718_v18 = vmul.f32 -1.442695, %v1125_v55  ;;  %v1719_v34 = vmul.f32 -1.442695, %v1126_v9  ;;  %v1720_v40 = vmul.f32 -1.442695, %v1127_v6 }
 0x22b   : > { %1989 = vpow2.f32 %v1716_v33  ;;  %v1721_v22 = vmul.f32 -1.442695, %v1128_v12  ;;  %v1722_v52 = vmul.f32 -1.442695, %v1129_v28 }
 0x22c   : > { %1991 = vpow2.f32 %v1717_v36 }
 0x22d   : > { %1993 = vpow2.f32 %v1718_v18 }
 0x22e   : > { %1995 = vpow2.f32 %v1719_v34 }
 0x22f   : > { %1997 = vpow2.f32 %v1720_v40 }
 0x230   : > { %1999 = vpow2.f32 %v1721_v22 }
 0x231   : > { %2001 = vpow2.f32 %v1722_v52  ;;  %v1909_v52 = vld [vmem:[%s2542_s11] sm:$0xff]  }
 0x232   : > { %2003 = vpow2.f32 %v1723_v62  ;;  %1834 = vmatprep.subr.bf16.mxu0 %v1909_v52  ;;  %v1910_v62 = vld [vmem:[%s2542_s11 + $0x8] sm:$0xff]  }
 0x233   : > { %1835 = vmatpush3.bf16.msra.mxu0 %v1909_v52 }
 0x234   : > { %1836 = vmatprep.subr.bf16.mxu0 %v1910_v62 }
 0x235   : > { %v1990_v3 = vpop.eup %1989 }
 0x236   : > { %v1992_v16 = vpop.eup %1991  ;;  %v1155_v39 = vadd.f32 1.0, %v1990_v3  ;;  %v1911_v3 = vld [vmem:[%s2542_s11 + $0x10] sm:$0xff]  }
 0x237   : > { %v1994_v30 = vpop.eup %1993  ;;  %v1156_v14 = vadd.f32 1.0, %v1992_v16  ;;  %1837 = vmatpush3.bf16.msra.mxu0 %v1910_v62  ;;  %v1912_v16 = vld [vmem:[%s2542_s11 + $0x18] sm:$0xff]  }
 0x238   : > { %v1996_v48 = vpop.eup %1995  ;;  %v1157_v17 = vadd.f32 1.0, %v1994_v30  ;;  %2005 = vrcp.f32 %v1155_v39  ;;  %1838 = vmatprep.subr.bf16.mxu0 %v1911_v3  ;;  %v1913_v39 = vld [vmem:[%s2542_s11 + $0x20] sm:$0xff]   ;;  %v1914_v30 = vld [vmem:[%s2542_s11 + $0x28] sm:$0xff]  }
 0x239   : > { %v1998_v54 = vpop.eup %1997  ;;  %v1158_v58 = vadd.f32 1.0, %v1996_v48  ;;  %2007 = vrcp.f32 %v1156_v14  ;;  %v1915_v14 = vld [vmem:[%s2542_s11 + $0x30] sm:$0xff]   ;;  %v1916_v48 = vld [vmem:[%s2542_s11 + $0x38] sm:$0xff]  }
 0x23a   : > { %v2000_v59 = vpop.eup %1999  ;;  %v1159_v4 = vadd.f32 1.0, %v1998_v54  ;;  %2009 = vrcp.f32 %v1157_v17  ;;  %v1917_v17 = vld [vmem:[%s2544_s13] sm:$0xff]   ;;  %v1918_v54 = vld [vmem:[%s2544_s13 + $0x8] sm:$0xff]  }
 0x23b   : > { %v2002_v60 = vpop.eup %2001  ;;  %v1160_v13 = vadd.f32 1.0, %v2000_v59  ;;  %2011 = vrcp.f32 %v1158_v58  ;;  %1839 = vmatpush3.bf16.msra.mxu0 %v1911_v3  ;;  %1858 = vmatprep.subr.bf16.mxu1 %v1917_v17  ;;  %v1919_v58 = vld [vmem:[%s2544_s13 + $0x10] sm:$0xff]   ;;  %v1920_v59 = vld [vmem:[%s2544_s13 + $0x18] sm:$0xff]  }
 0x23c   : > { %v2004_v7 = vpop.eup %2003  ;;  %2013 = vrcp.f32 %v1159_v4  ;;  %v1161_v5 = vadd.f32 1.0, %v2002_v60  ;;  %1840 = vmatprep.subr.bf16.mxu0 %v1912_v16  ;;  %1859 = vmatpush3.bf16.msra.mxu1 %v1917_v17  ;;  %v1921_v4 = vld [vmem:[%s2544_s13 + $0x20] sm:$0xff]   ;;  %v1922_v60 = vld [vmem:[%s2544_s13 + $0x28] sm:$0xff]  }
 0x23d   : > { %2015 = vrcp.f32 %v1160_v13  ;;  %v1162_v23 = vadd.f32 1.0, %v2004_v7  ;;  %1860 = vmatprep.subr.bf16.mxu1 %v1918_v54  ;;  %v1224_v13 = vld [vmem:[%s2540_s9] sm:$0xff] }
 0x23e   : > { %2017 = vrcp.f32 %v1161_v5 }
 0x23f   : > { %2019 = vrcp.f32 %v1162_v23  ;;  %1841 = vmatpush3.bf16.msra.mxu0 %v1912_v16 }
 0x240   : > { %1842 = vmatprep.subr.bf16.mxu0 %v1913_v39  ;;  %1861 = vmatpush3.bf16.msra.mxu1 %v1918_v54 }
 0x241   : > { %1862 = vmatprep.subr.bf16.mxu1 %v1919_v58 }
 0x242   : > { %v2006_v21 = vpop.eup %2005 }
 0x243   : > { %v2008_v29 = vpop.eup %2007  ;;  %v2418_v51 = vmul.f32 %v2006_v21, %v1123_v38  ;;  %1843 = vmatpush3.bf16.msra.mxu0 %v1913_v39 }
 0x244   : > { %v2010_v20 = vpop.eup %2009  ;;  %v2420_v47 = vmul.f32 %v2008_v29, %v1124_v19  ;;  %v1202_v19 = vld [vmem:[%s2538_s7] sm:$0xff]  ;;  %1844 = vmatprep.subr.bf16.mxu0 %v1914_v30  ;;  %1863 = vmatpush3.bf16.msra.mxu1 %v1919_v58  ;;  %v2555_v58 = vld [vmem:[#allocation6_spill] sm:$0xff] }
 0x245   : > { %v2012_v53 = vpop.eup %2011  ;;  %v2422_v44 = vmul.f32 %v2010_v20, %v1125_v55  ;;  %1864 = vmatprep.subr.bf16.mxu1 %v1920_v59 }
 0x246   : > { %v2014_v25 = vpop.eup %2013  ;;  %v2424_v31 = vmul.f32 %v2012_v53, %v1126_v9  ;;  %v1187_v50 = vadd.f32 %v2420_v47, %v2418_v51 }
 0x247   : > { %v2016_v41 = vpop.eup %2015  ;;  %v2428_v61 = vmul.f32 %v2014_v25, %v1127_v6  ;;  %v1724_v6 = vld [vmem:[%s2539_s8] ss:$0 sm:$0xff]  ;;  %1845 = vmatpush3.bf16.msra.mxu0 %v1914_v30 }
 0x248   : > { %v1188_v37 = vadd.f32 %v1187_v50, %v2422_v44  ;;  %v2431_v24 = vmul.f32 %v2016_v41, %v1128_v12  ;;  %v2018_v56 = vpop.eup %2017  ;;  %v2071_v12 = vmov 0   ;;  %1846 = vmatprep.subr.bf16.mxu0 %v1915_v14  ;;  %1865 = vmatpush3.bf16.msra.mxu1 %v1920_v59  ;;  %v1237_v25 = vld [vmem:[%s2541_s10] sm:$0x1] }
 0x249   : > { %v2020_v45 = vpop.eup %2019  ;;  %v2435_v27 = vmul.f32 %v2018_v56, %v1129_v28  ;;  %1893 = vset.pattern.permute.xlu1 %v2071_v12  ;;  %1894 = vset.pattern.permute.xlu0 %v2071_v12  ;;  %v2556_v59 = vld [vmem:[#allocation3_spill] sm:$0xff] }
 0x24a   : > { %v1189_v8 = vadd.f32 %v1188_v37, %v2424_v31  ;;  %v2438_v43 = vmul.f32 %v2020_v45, %v1130_v57  ;;  %1866 = vmatprep.subr.bf16.mxu1 %v1921_v4 }
 0x24b   : > { %1847 = vmatpush3.bf16.msra.mxu0 %v1915_v14 }
 0x24c   : > { %v1190_v42 = vadd.f32 %v1189_v8, %v2428_v61  ;;  %1848 = vmatprep.subr.bf16.mxu0 %v1916_v48  ;;  %1867 = vmatpush3.bf16.msra.mxu1 %v1921_v4  ;;  %v2557_v4 = vld [vmem:[#allocation4_spill] sm:$0xff] }
 0x24d   : > { %1868 = vmatprep.subr.bf16.mxu1 %v1922_v60 }
 0x24e   : > { %v1191_v35 = vadd.f32 %v1190_v42, %v2431_v24  ;;  %v1245_v42 = vlaneseq }
 0x24f   : > { %1849 = vmatpush3.bf16.msra.mxu0 %v1916_v48 }
 0x250   : > { %v1192_v46 = vadd.f32 %v1191_v35, %v2435_v27  ;;  %1869 = vmatpush3.bf16.msra.mxu1 %v1922_v60  ;;  %v1246_v45 = vshrl.u32 %v1245_v42, 7  ;;  %v2558_v60 = vld [vmem:[#allocation5_spill] sm:$0xff] }
 0x252   : > { %v1193_v49 = vadd.f32 %v1192_v46, %v2438_v43  ;;  %v1247_v35 = vsub.s32 0, %v1246_v45 }
 0x254   : > { %v1194_v11 = vrot.slane %v1193_v49, 4 }
 0x256   : > { %v1195_v26 = vadd.f32 %v1194_v11, %v1193_v49 }
 0x258   : > { %v1196_v10 = vrot.slane %v1195_v26, 2 }
 0x25a   : > { %v1197_v32 = vadd.f32 %v1196_v10, %v1195_v26 }
 0x25c   : > { %v1198_v15 = vrot.slane %v1197_v32, 1 }
 0x25e   : > { %v1199_v38 = vadd.f32 %v1198_v15, %v1197_v32 }
 0x260   : > { %v1201_v55 = vmul.f32 0.015625, %v1199_v38 }
 0x262   : > { %v1203_v9 = vmul.f32 %v1202_v19, %v1201_v55 }
 0x264   : > { %1204 = vadd.xlane.f32.xlu0 %v1203_v9 }
 0x27a   : > { %1213 = vbcast.lane.b32.xlu0 %v1724_v6, 256 }
 0x2f1   : > { %v1205_v28 = vpop.xlane.xlu0 %1204 }
 0x2f5   : > { %v1214_v33 = vpop.permute.xlu0 %1213 }
 0x2f6   : > { %v1216_v36 = vadd.f32 %v1214_v33, %v1205_v28 }
 0x2f8   : > { %v1725_v57 = vmul.f32 -1.442695, %v1216_v36 }
 0x2fa   : > { %2021 = vpow2.f32 %v1725_v57 }
 0x304   : > { %v2022_v18 = vpop.eup %2021 }
 0x305   : > { %v1220_v34 = vadd.f32 1.0, %v2022_v18 }
 0x307   : > { %2023 = vrcp.f32 %v1220_v34 }
 0x311   : > { %v2024_v40 = vpop.eup %2023 }
 0x312   : > { %v1223_v22 = vmul.f32 %v2024_v40, %v1216_v36 }
 0x314   : > { %1227 = vperm.xlu1 %1893, %v1223_v22  }
 0x393   : > { %v1228_v7 = vpop.permute.xlu1 %1227 }
 0x394   : > { %v1230_v5 = vmul.f32 %v1228_v7, %v1224_v13 }
 0x396   : > { %v1231_v23 = vrot.slane %v1230_v5, 4 }
 0x398   : > { %v1232_v21 = vadd.f32 %v1231_v23, %v1230_v5  ;;  %v1736_v5 = vld [vmem:[%s2545_s14] ss:$0 sm:$0xff] }
 0x39a   : > { %v1233_v29 = vrot.slane %v1232_v21, 2 }
 0x39c   : > { %v1234_v20 = vadd.f32 %v1233_v29, %v1232_v21 }
 0x39e   : > { %v1235_v53 = vrot.slane %v1234_v20, 1 }
 0x3a0   : > { %v1236_v50 = vadd.f32 %v1235_v53, %v1234_v20 }
 0x3a2   : > { %v1238_v41 = vadd.f32 %v1237_v25, %v1236_v50 }
 0x3a4   : > { %v1726_v37 = vmul.f32 -1.442695, %v1238_v41 }
 0x3a6   : > { %2025 = vpow2.f32 %v1726_v37 }
 0x3b0   : > { %v2026_v8 = vpop.eup %2025 }
 0x3b1   : > { %v1242_v56 = vadd.f32 1.0, %v2026_v8 }
 0x3b3   : > { %2027 = vrcp.f32 %v1242_v56 }
 0x3bd   : > { %v2028_v46 = vpop.eup %2027 }
 0x3be   : > { %v1248_v49 = vrot.slane %v2028_v46, %v1247_v35 }
 0x3c0   : > { %v1249_v11 = vmul.f32 %v1248_v49, %v2418_v51  ;;  %v1250_v26 = vmul.f32 %v1248_v49, %v2420_v47  ;;  %v1251_v10 = vmul.f32 %v1248_v49, %v2422_v44  ;;  %v1252_v32 = vmul.f32 %v1248_v49, %v2424_v31  ;;  %v1923_v47 = vld [vmem:[%s2544_s13 + $0x30] sm:$0xff]   ;;  %v1924_v44 = vld [vmem:[%s2544_s13 + $0x38] sm:$0xff]   ;;  %v1727_v31 = vld [vmem:[%s2543_s12] ss:$0 sm:$0xff] }
 0x3c1   : > { %v1253_v15 = vmul.f32 %v1248_v49, %v2428_v61  ;;  %v1254_v38 = vmul.f32 %v1248_v49, %v2431_v24  ;;  %v1255_v6 = vmul.f32 %v1248_v49, %v2435_v27  ;;  %v1256_v51 = vmul.f32 %v1248_v49, %v2438_v43  ;;  %1870 = vmatprep.subr.bf16.mxu1 %v1923_v47 }
 0x3c2   : > { %v1257_v19 = vpack.c.bf16 %v1250_v26, %v1249_v11  ;;  %v1258_v55 = vpack.c.bf16 %v1252_v32, %v1251_v10  ;;  %1871 = vmatpush3.bf16.msra.mxu1 %v1923_v47 }
 0x3c3   : > { %v1259_v9 = vpack.c.bf16 %v1254_v38, %v1253_v15  ;;  %v1260_v12 = vpack.c.bf16 %v1256_v51, %v1255_v6  ;;  %1872 = vmatprep.subr.bf16.mxu1 %v1924_v44 }
 0x3c4   : > { %1850 = vmatprep.mubr.bf16.mxu0 %v1257_v19 }
 0x3c5   : > { %1851 = vmatmul.mubr.bf16.vlgmr.msra.gmra.mrb[8].mxu0 %v1258_v55 }
 0x3c6   : > { %1854 = vmatprep.mubr.bf16.mxu0 %v1259_v9  ;;  %1873 = vmatpush3.bf16.msra.mxu1 %v1924_v44 }
 0x3cd   : > { %1855 = vmatmul.mubr.bf16.gmra.mrb[12].mxu0 %v1260_v12 }
 0x498   : > { %v1852_v61 = vpop.f32.mrb[8].mxu0 }
 0x499   : > { %v1375_v24 = vadd.f32 %v1852_v61, %v1727_v31  ;;  %v1366_v27 = vpop.f32.mrb[9].mxu0 }
 0x49a   : > { %v1367_v43 = vadd.f32 %v1727_v31, %v1366_v27  ;;  %v1853_v28 = vpop.f32.mrb[10].mxu0 }
 0x49b   : > { %v1378_v33 = vadd.f32 %v1853_v28, %v1727_v31  ;;  %v1369_v36 = vpop.f32.mrb[11].mxu0  ;;  %v1399_v18 = vadd.f32 %v1375_v24, %v2205_v2 }
 0x49c   : > { %v1370_v57 = vadd.f32 %v1727_v31, %v1369_v36  ;;  %v1397_v40 = vadd.f32 %v1367_v43, %v2201_v0 }
 0x49d   : > { %v1400_v34 = vadd.f32 %v1378_v33, %v2199_v63 }
 0x49e   : > { %v1398_v22 = vadd.f32 %v1370_v57, %v2203_v1 }
 0x49f   : > { %v1406_v52 = vpack.c.bf16 %v1400_v34, %v1399_v18 }
 0x4a0   : > { %v1856_v62 = vpop.f32.mrb[12].mxu0  ;;  %v1405_v3 = vpack.c.bf16 %v1398_v22, %v1397_v40 }
 0x4a1   : > { %v1391_v16 = vadd.f32 %v1856_v62, %v1727_v31  ;;  %v1382_v39 = vpop.f32.mrb[13].mxu0 }
 0x4a2   : > { %v1383_v30 = vadd.f32 %v1727_v31, %v1382_v39  ;;  %v1857_v14 = vpop.f32.mrb[14].mxu0  ;;  %1874 = vmatprep.mubr.bf16.mxu1 %v1405_v3 }
 0x4a3   : > { %v1394_v48 = vadd.f32 %v1857_v14, %v1727_v31  ;;  %v1385_v17 = vpop.f32.mrb[15].mxu0  ;;  %1875 = vmatmul.mubr.bf16.vlgmr.msra.gmra.mrb[8].mxu1 %v1406_v52  ;;  %v1403_v2 = vadd.f32 %v1391_v16, %v2555_v58 }
 0x4a4   : > { %v1386_v54 = vadd.f32 %v1727_v31, %v1385_v17  ;;  %v1401_v0 = vadd.f32 %v1383_v30, %v2557_v4 }
 0x4a5   : > { %v1404_v63 = vadd.f32 %v1394_v48, %v2556_v59 }
 0x4a6   : > { %v1402_v1 = vadd.f32 %v1386_v54, %v2558_v60 }
 0x4a7   : > { %v1408_v13 = vpack.c.bf16 %v1404_v63, %v1403_v2 }
 0x4a8   : > { %v1407_v7 = vpack.c.bf16 %v1402_v1, %v1401_v0 }
 0x4aa   : > { %1878 = vmatprep.mubr.bf16.mxu1 %v1407_v7 }
 0x4ab   : > { %1879 = vmatmul.mubr.bf16.gmra.mrb[12].mxu1 %v1408_v13 }
 0x576   : > { %v1876_v23 = vpop.f32.mrb[8].mxu1 }
 0x577   : > { %v1523_v21 = vadd.f32 %v1876_v23, %v1736_v5  ;;  %v1514_v29 = vpop.f32.mrb[9].mxu1 }
 0x578   : > { %v1515_v20 = vadd.f32 %v1736_v5, %v1514_v29  ;;  %v1877_v53 = vpop.f32.mrb[10].mxu1 }
 0x579   : > { %v1747_v25 = vmul.f32 -1.442695, %v1523_v21  ;;  %v1526_v50 = vadd.f32 %v1877_v53, %v1736_v5  ;;  %v1517_v41 = vpop.f32.mrb[11].mxu1 }
 0x57a   : > { %v1745_v37 = vmul.f32 -1.442695, %v1515_v20  ;;  %v1518_v8 = vadd.f32 %v1736_v5, %v1517_v41 }
 0x57b   : > { %2029 = vpow2.f32 %v1747_v25  ;;  %v1748_v56 = vmul.f32 -1.442695, %v1526_v50 }
 0x57c   : > { %2031 = vpow2.f32 %v1745_v37  ;;  %v1746_v42 = vmul.f32 -1.442695, %v1518_v8 }
 0x57d   : > { %2033 = vpow2.f32 %v1748_v56 }
 0x57e   : > { %2035 = vpow2.f32 %v1746_v42  ;;  %v1880_v45 = vpop.f32.mrb[12].mxu1 }
 0x57f   : > { %v1539_v35 = vadd.f32 %v1880_v45, %v1736_v5  ;;  %v1530_v46 = vpop.f32.mrb[13].mxu1 }
 0x580   : > { %v1531_v49 = vadd.f32 %v1736_v5, %v1530_v46  ;;  %v1881_v11 = vpop.f32.mrb[14].mxu1 }
 0x581   : > { %v1751_v26 = vmul.f32 -1.442695, %v1539_v35  ;;  %v1542_v10 = vadd.f32 %v1881_v11, %v1736_v5  ;;  %v1533_v32 = vpop.f32.mrb[15].mxu1 }
 0x582   : > { %v1749_v15 = vmul.f32 -1.442695, %v1531_v49  ;;  %v1534_v38 = vadd.f32 %v1736_v5, %v1533_v32 }
 0x583   : > { %2037 = vpow2.f32 %v1751_v26  ;;  %v1752_v19 = vmul.f32 -1.442695, %v1542_v10 }
 0x584   : > { %2039 = vpow2.f32 %v1749_v15  ;;  %v1750_v55 = vmul.f32 -1.442695, %v1534_v38 }
 0x585   : > { %v2030_v9 = vpop.eup %2029  ;;  %2041 = vpow2.f32 %v1752_v19 }
 0x586   : > { %v2032_v6 = vpop.eup %2031  ;;  %v1571_v51 = vadd.f32 1.0, %v2030_v9  ;;  %2043 = vpow2.f32 %v1750_v55 }
 0x587   : > { %v2034_v12 = vpop.eup %2033  ;;  %v1569_v47 = vadd.f32 1.0, %v2032_v6 }
 0x588   : > { %v2036_v44 = vpop.eup %2035  ;;  %v1572_v31 = vadd.f32 1.0, %v2034_v12 }
 0x589   : > { %2045 = vrcp.f32 %v1569_v47  ;;  %v1570_v61 = vadd.f32 1.0, %v2036_v44 }
 0x58a   : > { %2047 = vrcp.f32 %v1571_v51 }
 0x58b   : > { %2049 = vrcp.f32 %v1570_v61 }
 0x58c   : > { %2051 = vrcp.f32 %v1572_v31 }
 0x58d   : > { %v2038_v24 = vpop.eup %2037 }
 0x58e   : > { %v2040_v27 = vpop.eup %2039  ;;  %v1575_v43 = vadd.f32 1.0, %v2038_v24 }
 0x58f   : > { %v2042_v28 = vpop.eup %2041  ;;  %v1573_v33 = vadd.f32 1.0, %v2040_v27 }
 0x590   : > { %v2044_v36 = vpop.eup %2043  ;;  %v1576_v57 = vadd.f32 1.0, %v2042_v28 }
 0x591   : > { %2053 = vrcp.f32 %v1573_v33  ;;  %v1574_v18 = vadd.f32 1.0, %v2044_v36 }
 0x592   : > { %2055 = vrcp.f32 %v1575_v43 }
 0x593   : > { %v2046_v34 = vpop.eup %2045  ;;  %2057 = vrcp.f32 %v1574_v18 }
 0x594   : > { %v2048_v40 = vpop.eup %2047  ;;  %2059 = vrcp.f32 %v1576_v57  ;;  %v1593_v52 = vmul.f32 %v2046_v34, %v1515_v20 }
 0x595   : > { %v2050_v22 = vpop.eup %2049  ;;  %v1595_v16 = vmul.f32 %v2048_v40, %v1523_v21 }
 0x596   : > { %v1594_v62 = vmul.f32 %v2050_v22, %v1518_v8  ;;  %v2052_v3 = vpop.eup %2051 }
 0x597   : > { %v1596_v30 = vmul.f32 %v2052_v3, %v1526_v50 }
 0x598   : > { %v1601_v39 = vadd.f32 %v1594_v62, %v1593_v52 }
 0x59a   : > { %v1602_v14 = vadd.f32 %v1601_v39, %v1595_v16 }
 0x59b   : > { %v2054_v48 = vpop.eup %2053 }
 0x59c   : > { %v2056_v17 = vpop.eup %2055  ;;  %v1597_v54 = vmul.f32 %v2054_v48, %v1531_v49  ;;  %v1603_v58 = vadd.f32 %v1602_v14, %v1596_v30 }
 0x59d   : > { %v2058_v2 = vpop.eup %2057  ;;  %v1599_v0 = vmul.f32 %v2056_v17, %v1539_v35 }
 0x59e   : > { %v1604_v59 = vadd.f32 %v1603_v58, %v1597_v54  ;;  %v1598_v63 = vmul.f32 %v2058_v2, %v1534_v38  ;;  %v2060_v4 = vpop.eup %2059 }
 0x59f   : > { %v1600_v1 = vmul.f32 %v2060_v4, %v1542_v10 }
 0x5a0   : > { %v1605_v60 = vadd.f32 %v1604_v59, %v1598_v63 }
 0x5a2   : > { %v1606_v13 = vadd.f32 %v1605_v60, %v1599_v0 }
 0x5a4   : > { %v1607_v7 = vadd.f32 %v1606_v13, %v1600_v1 }
 0x5a6   : > { %v1608_v5 = vrot.slane %v1607_v7, 4 }
 0x5a8   : > { %v1609_v23 = vadd.f32 %v1608_v5, %v1607_v7 }
 0x5aa   : > { %v1610_v21 = vrot.slane %v1609_v23, 2 }
 0x5ac   : > { %v1611_v29 = vadd.f32 %v1610_v21, %v1609_v23 }
 0x5ae   : > { %v1612_v20 = vrot.slane %v1611_v29, 1 }
 0x5b0   : > { %v1613_v53 = vadd.f32 %v1612_v20, %v1611_v29 }
 0x5b2   : > { %v1614_v25 = vmul.f32 0.015625, %v1613_v53 }
 0x5b4   : > { %1615 = vst [vmem:[%s490_s23] sm:$0x1] %v1614_v25 }
 0x5b5 PF: > { %s25_s18 = sadd.s32 1, %s2067_s18  }
 0x5b6   : > { %p22_p4 = scmp.ge.s32.totalorder %s25_s18, 4  }
 0x5b8   :  { %24 = sbr.rel (!%p22_p4) target bundleno = 1 (0x1), region = 110 }

</bundles_post_ra>
